<compile_context>
chip_gen: v7x
topology: tpu7x:2x2x1
jax: 0.10.0
libtpu: 0.0.40
codegen_flags: <defaults>
</compile_context>

<pallas_src>
import functools

import jax
import jax.numpy as jnp
import numpy as np
from jax.experimental import pallas as pl
from jax.experimental.pallas import tpu as pltpu


def _decoder_kernel(x_ref, enc_ref,
                    w_qkv_ref, b_qkv_ref, w_o_ref, b_o_ref,
                    w1_ref, b1_ref, w2_ref, b2_ref,
                    gamma_ref, beta_ref,
                    o_ref,
                    *, num_heads: int, block_b: int, seq_len: int,
                    matmul_dtype):
    x = x_ref[...].astype(jnp.float32)      # (N, D), N = block_b * S (flat rows)
    enc = enc_ref[...].astype(jnp.float32)  # (N, D)
    N, D = x.shape
    S = seq_len
    BB = block_b
    H = num_heads
    hd = D // H
    scale = 1.0 / float(np.sqrt(hd))

    # Pre-transposed weights (wrapper did the transposes once, host-side).
    w_qkv = w_qkv_ref[...].astype(jnp.float32)  # (D, 3D) = [Wq^T | Wk^T | Wv^T]
    w_o = w_o_ref[...].astype(jnp.float32)      # (D, D)
    w1 = w1_ref[...].astype(jnp.float32)        # (D, D)
    w2 = w2_ref[...].astype(jnp.float32)        # (D, D)
    # Static column splits hoisted once (reused by the cross-attention call).
    w_q = w_qkv[:, :D]
    w_kv = w_qkv[:, D:]

    # Hoisted broadcasts: done once, reused by every layer call below.
    b_qkv = jnp.broadcast_to(b_qkv_ref[...].astype(jnp.float32), (N, 3 * D))
    b_o = jnp.broadcast_to(b_o_ref[...].astype(jnp.float32), (N, D))
    b1 = jnp.broadcast_to(b1_ref[...].astype(jnp.float32), (N, D))
    b2 = jnp.broadcast_to(b2_ref[...].astype(jnp.float32), (N, D))
    gamma = jnp.broadcast_to(gamma_ref[...].astype(jnp.float32), (N, D))
    beta = jnp.broadcast_to(beta_ref[...].astype(jnp.float32), (N, D))

    # Additive causal-mask bias (strict upper triangle masked), built and
    # broadcast to the folded-batch shape ONCE -> reused by all 2*H score adds.
    row = jax.lax.broadcasted_iota(jnp.int32, (S, S), 0)
    col = jax.lax.broadcasted_iota(jnp.int32, (S, S), 1)
    mask2d = jnp.where(col > row, jnp.float32(-1e30), jnp.float32(0.0))
    mask_bias = jnp.broadcast_to(mask2d[None, :, :], (BB, S, S))

    def mm(a, b):
        # MXU matmul: operands optionally in bf16, accumulation always f32.
        return jnp.dot(a.astype(matmul_dtype), b.astype(matmul_dtype),
                       preferred_element_type=jnp.float32)

    def bmm(spec, a, b):
        return jnp.einsum(spec, a.astype(matmul_dtype), b.astype(matmul_dtype),
                          preferred_element_type=jnp.float32)

    def layernorm(v):
        mu = jnp.mean(v, axis=-1, keepdims=True)
        var = jnp.mean((v - mu) * (v - mu), axis=-1, keepdims=True)
        return (v - mu) * jax.lax.rsqrt(var + 1e-5) * gamma + beta

    def mha(q_in, kv_in, *, self_attn):
        if self_attn:
            # One fused matmul produces Q, K and V.
            qkv = mm(q_in, w_qkv) + b_qkv
            q, k, v = qkv[:, :D], qkv[:, D:2 * D], qkv[:, 2 * D:]
        else:
            q = mm(q_in, w_q) + b_qkv[:, :D]
            kv = mm(kv_in, w_kv) + b_qkv[:, D:]
            k, v = kv[:, :D], kv[:, D:]

        # Heads: short unrolled loop; inside each head the folded batch is a
        # single leading batch dim of the einsum (supported batched matmul
        # form on Mosaic).  Head outputs go straight into the corresponding
        # row-block of the output projection -> no concat relayout.
        attn = None
        for h in range(H):
            c0, c1 = h * hd, (h + 1) * hd
            qh = q[:, c0:c1].reshape(BB, S, hd)
            kh = k[:, c0:c1].reshape(BB, S, hd)
            vh = v[:, c0:c1].reshape(BB, S, hd)
            s = bmm('bqd,bkd->bqk', qh, kh) * scale + mask_bias
            s = s - jnp.max(s, axis=-1, keepdims=True)
            e = jnp.exp(s)
            p = e * pl.reciprocal(jnp.sum(e, axis=-1, keepdims=True),
                                  approx=True)
            ctx = bmm('bqk,bkd->bqd', p, vh)            # (BB, S, hd)
            part = mm(ctx.reshape(N, hd), w_o[c0:c1, :])
            attn = part if attn is None else attn + part
        return attn + b_o

    def ffn(v):
        h = jnp.maximum(mm(v, w1) + b1, 0.0)
        # Dropout is a no-op at inference.
        return mm(h, w2) + b2

    h1 = layernorm(mha(x, x, self_attn=True) + x)
    h2 = layernorm(mha(h1, enc, self_attn=False) + h1)
    out = layernorm(ffn(h2) + h2)

    o_ref[...] = out.astype(o_ref.dtype)


def decoder_forward(x, enc, params, num_heads, *, block_b=None,
                    matmul_dtype=jnp.float32):
    """x, enc: (B, S, D).  params in the original (PyTorch-layout) order."""
    B, S, D = x.shape
    (w_in, b_in, w_out, b_out, w1, b1, w2, b2, gamma, beta) = params

    # Host-side, one-time weight plumbing: pre-transpose everything (and fuse
    # Wq/Wk/Wv) so the kernel only ever computes `rows @ weight`.
    w_qkv = jnp.transpose(w_in)     # (D, 3D) == [Wq^T | Wk^T | Wv^T]
    w_o_t = jnp.transpose(w_out)    # (D, D)
    w1_t = jnp.transpose(w1)        # (D, D)
    w2_t = jnp.transpose(w2)        # (D, D)

    if block_b is None:
        # Largest divisor of B with block rows (block_b*S) near 128: real MXU
        # M dimension per step, while larger B still yields a multi-step
        # "parallel" grid (sharded across v7x's two TensorCores).
        cap = max(1, 128 // S)
        block_b = 1
        for cand in range(1, B + 1):
            if B % cand == 0 and cand <= cap:
                block_b = cand
    assert B % block_b == 0
    grid = (B // block_b,)
    rows = block_b * S

    # Flatten batch*seq into the row (sublane) axis: lane/sublane-dense slabs.
    x2 = x.reshape(B * S, D)
    enc2 = enc.reshape(B * S, D)

    dmap = lambda i: (i, 0)
    wmap = lambda i: (0, 0)

    in_specs = [
        pl.BlockSpec((rows, D), dmap),          # x   (flattened batch*seq)
        pl.BlockSpec((rows, D), dmap),          # encoded
        pl.BlockSpec((D, 3 * D), wmap),         # fused pre-transposed QKV weight
        pl.BlockSpec((1, 3 * D), wmap),         # fused QKV bias
        pl.BlockSpec((D, D), wmap),             # out-proj weight (pre-T)
        pl.BlockSpec((1, D), wmap),             # out-proj bias
        pl.BlockSpec((D, D), wmap),             # FFN linear1 weight (pre-T)
        pl.BlockSpec((1, D), wmap),             # FFN linear1 bias
        pl.BlockSpec((D, D), wmap),             # FFN linear2 weight (pre-T)
        pl.BlockSpec((1, D), wmap),             # FFN linear2 bias
        pl.BlockSpec((1, D), wmap),             # LN gamma
        pl.BlockSpec((1, D), wmap),             # LN beta
    ]
    out_specs = pl.BlockSpec((rows, D), dmap)

    kernel = functools.partial(_decoder_kernel, num_heads=num_heads,
                               block_b=block_b, seq_len=S,
                               matmul_dtype=matmul_dtype)
    out = pl.pallas_call(
        kernel,
        out_shape=jax.ShapeDtypeStruct((B * S, D), jnp.float32),
        grid=grid,
        in_specs=in_specs,
        out_specs=out_specs,
        compiler_params=pltpu.CompilerParams(
            dimension_semantics=("parallel",)),
    )(x2, enc2, w_qkv, b_in, w_o_t, b_out, w1_t, b1, w2_t, b2, gamma, beta)
    return out.reshape(B, S, D)


def _reference(x, enc, params, num_heads):
    """Pure-JAX reference (same math as the PyTorch module, eval mode)."""
    (w_in, b_in, w_out, b_out, w1, b1, w2, b2, gamma, beta) = params
    B, S, D = x.shape
    H = num_heads
    hd = D // H
    masked = np.triu(np.ones((S, S)), k=1).astype(bool)

    def ln(v):
        mu = jnp.mean(v, axis=-1, keepdims=True)
        var = jnp.mean((v - mu) ** 2, axis=-1, keepdims=True)
        return (v - mu) / jnp.sqrt(var + 1e-5) * gamma + beta

    def mha(q_in, kv_in):
        q = q_in @ w_in[:D].T + b_in[0, :D]
        k = kv_in @ w_in[D:2 * D].T + b_in[0, D:2 * D]
        v = kv_in @ w_in[2 * D:].T + b_in[0, 2 * D:]
        q = q.reshape(B, S, H, hd).transpose(0, 2, 1, 3)
        k = k.reshape(B, S, H, hd).transpose(0, 2, 1, 3)
        v = v.reshape(B, S, H, hd).transpose(0, 2, 1, 3)
        s = jnp.einsum('bhqd,bhkd->bhqk', q, k) / np.sqrt(hd)
        s = jnp.where(masked, -jnp.inf, s)
        p = jax.nn.softmax(s, axis=-1)
        o = jnp.einsum('bhqk,bhkd->bhqd', p, v)
        o = o.transpose(0, 2, 1, 3).reshape(B, S, D)
        return o @ w_out.T + b_out

    def ffn(v):
        return jnp.maximum(v @ w1.T + b1, 0.0) @ w2.T + b2

    h1 = ln(mha(x, x) + x)
    h2 = ln(mha(h1, enc) + h1)
    return ln(ffn(h2) + h2)


if __name__ == "__main__":
    B, S, D, H = 2, 8, 32, 4   # batch, window_size (seq), dim, heads

    key = jax.random.PRNGKey(0)
    ks = jax.random.split(key, 10)
    s = 0.1
    params = (
        s * jax.random.normal(ks[0], (3 * D, D), jnp.float32),   # in_proj_weight
        s * jax.random.normal(ks[1], (1, 3 * D), jnp.float32),   # in_proj_bias
        s * jax.random.normal(ks[2], (D, D), jnp.float32),       # out_proj.weight
        s * jax.random.normal(ks[3], (1, D), jnp.float32),       # out_proj.bias
        s * jax.random.normal(ks[4], (D, D), jnp.float32),       # FFN lin1 weight
        s * jax.random.normal(ks[5], (1, D), jnp.float32),       # FFN lin1 bias
        s * jax.random.normal(ks[6], (D, D), jnp.float32),       # FFN lin2 weight
        s * jax.random.normal(ks[7], (1, D), jnp.float32),       # FFN lin2 bias
        jnp.ones((1, D), jnp.float32),                           # LN gamma
        jnp.zeros((1, D), jnp.float32),                          # LN beta
    )

    x = jax.random.normal(ks[8], (B, S, D), jnp.float32)
    enc = jax.random.normal(ks[9], (B, S, D), jnp.float32)

    out = jax.block_until_ready(decoder_forward(x, enc, params, H))
    ref = jax.block_until_ready(_reference(x, enc, params, H))

    # Tolerance covers the approximate EUP reciprocal used for softmax
    # normalisation (set matmul_dtype=jnp.bfloat16 on v6e/v7x for more speed
    # at correspondingly looser tolerance).
    np.testing.assert_allclose(np.asarray(out), np.asarray(ref),
                               rtol=5e-3, atol=5e-3)
    print("KERNEL_OK")
</pallas_src>

<mosaic_0001>
module attributes {stable_mosaic.version = 11 : i64} {
  func.func @_decoder_kernel(%arg0: i32, %arg1: memref<16x32xf32, #tpu.memory_space<vmem>>, %arg2: memref<16x32xf32, #tpu.memory_space<vmem>>, %arg3: memref<32x96xf32, #tpu.memory_space<vmem>>, %arg4: memref<1x96xf32, #tpu.memory_space<vmem>>, %arg5: memref<32x32xf32, #tpu.memory_space<vmem>>, %arg6: memref<1x32xf32, #tpu.memory_space<vmem>>, %arg7: memref<32x32xf32, #tpu.memory_space<vmem>>, %arg8: memref<1x32xf32, #tpu.memory_space<vmem>>, %arg9: memref<32x32xf32, #tpu.memory_space<vmem>>, %arg10: memref<1x32xf32, #tpu.memory_space<vmem>>, %arg11: memref<1x32xf32, #tpu.memory_space<vmem>>, %arg12: memref<1x32xf32, #tpu.memory_space<vmem>>, %arg13: memref<16x32xf32, #tpu.memory_space<vmem>>) attributes {dimension_semantics = [#tpu.dimension_semantics<parallel>], iteration_bounds = array<i64: 1>, scalar_prefetch = 0 : i64, scratch_operands = 0 : i64, tpu.core_type = #tpu.core_type<tc>, window_params = [{transform_indices = @transform_0, window_bounds = array<i64: 16, 32>}, {transform_indices = @transform_1, window_bounds = array<i64: 16, 32>}, {pipeline_mode = #tpu.pipeline_mode<synchronous>, transform_indices = @transform_2, window_bounds = array<i64: 32, 96>}, {pipeline_mode = #tpu.pipeline_mode<synchronous>, transform_indices = @transform_3, window_bounds = array<i64: 1, 96>}, {pipeline_mode = #tpu.pipeline_mode<synchronous>, transform_indices = @transform_4, window_bounds = array<i64: 32, 32>}, {pipeline_mode = #tpu.pipeline_mode<synchronous>, transform_indices = @transform_5, window_bounds = array<i64: 1, 32>}, {pipeline_mode = #tpu.pipeline_mode<synchronous>, transform_indices = @transform_6, window_bounds = array<i64: 32, 32>}, {pipeline_mode = #tpu.pipeline_mode<synchronous>, transform_indices = @transform_7, window_bounds = array<i64: 1, 32>}, {pipeline_mode = #tpu.pipeline_mode<synchronous>, transform_indices = @transform_8, window_bounds = array<i64: 32, 32>}, {pipeline_mode = #tpu.pipeline_mode<synchronous>, transform_indices = @transform_9, window_bounds = array<i64: 1, 32>}, {pipeline_mode = #tpu.pipeline_mode<synchronous>, transform_indices = @transform_10, window_bounds = array<i64: 1, 32>}, {pipeline_mode = #tpu.pipeline_mode<synchronous>, transform_indices = @transform_11, window_bounds = array<i64: 1, 32>}, {transform_indices = @transform_12, window_bounds = array<i64: 16, 32>}]} {
    %c0 = arith.constant 0 : index
    %c0_0 = arith.constant 0 : index
    %0 = vector.load %arg1[%c0, %c0_0] : memref<16x32xf32, #tpu.memory_space<vmem>>, vector<16x32xf32>
    %c0_1 = arith.constant 0 : index
    %c0_2 = arith.constant 0 : index
    %1 = vector.load %arg2[%c0_1, %c0_2] : memref<16x32xf32, #tpu.memory_space<vmem>>, vector<16x32xf32>
    %c0_3 = arith.constant 0 : index
    %c0_4 = arith.constant 0 : index
    %2 = vector.load %arg3[%c0_3, %c0_4] : memref<32x96xf32, #tpu.memory_space<vmem>>, vector<32x96xf32>
    %c0_5 = arith.constant 0 : index
    %c0_6 = arith.constant 0 : index
    %3 = vector.load %arg5[%c0_5, %c0_6] : memref<32x32xf32, #tpu.memory_space<vmem>>, vector<32x32xf32>
    %c0_7 = arith.constant 0 : index
    %c0_8 = arith.constant 0 : index
    %4 = vector.load %arg7[%c0_7, %c0_8] : memref<32x32xf32, #tpu.memory_space<vmem>>, vector<32x32xf32>
    %c0_9 = arith.constant 0 : index
    %c0_10 = arith.constant 0 : index
    %5 = vector.load %arg9[%c0_9, %c0_10] : memref<32x32xf32, #tpu.memory_space<vmem>>, vector<32x32xf32>
    %6 = vector.extract_strided_slice %2 {offsets = [0, 0], sizes = [32, 32], strides = [1, 1]} : vector<32x96xf32> to vector<32x32xf32>
    %7 = vector.extract_strided_slice %2 {offsets = [0, 32], sizes = [32, 64], strides = [1, 1]} : vector<32x96xf32> to vector<32x64xf32>
    %c0_11 = arith.constant 0 : index
    %c0_12 = arith.constant 0 : index
    %8 = vector.load %arg4[%c0_11, %c0_12] : memref<1x96xf32, #tpu.memory_space<vmem>>, vector<1x96xf32>
    %9 = vector.shape_cast %8 : vector<1x96xf32> to vector<1x96xf32>
    %10 = vector.broadcast %9 : vector<1x96xf32> to vector<16x96xf32>
    %c0_13 = arith.constant 0 : index
    %c0_14 = arith.constant 0 : index
    %11 = vector.load %arg6[%c0_13, %c0_14] : memref<1x32xf32, #tpu.memory_space<vmem>>, vector<1x32xf32>
    %12 = vector.shape_cast %11 : vector<1x32xf32> to vector<1x32xf32>
    %13 = vector.broadcast %12 : vector<1x32xf32> to vector<16x32xf32>
    %c0_15 = arith.constant 0 : index
    %c0_16 = arith.constant 0 : index
    %14 = vector.load %arg8[%c0_15, %c0_16] : memref<1x32xf32, #tpu.memory_space<vmem>>, vector<1x32xf32>
    %15 = vector.shape_cast %14 : vector<1x32xf32> to vector<1x32xf32>
    %16 = vector.broadcast %15 : vector<1x32xf32> to vector<16x32xf32>
    %c0_17 = arith.constant 0 : index
    %c0_18 = arith.constant 0 : index
    %17 = vector.load %arg10[%c0_17, %c0_18] : memref<1x32xf32, #tpu.memory_space<vmem>>, vector<1x32xf32>
    %18 = vector.shape_cast %17 : vector<1x32xf32> to vector<1x32xf32>
    %19 = vector.broadcast %18 : vector<1x32xf32> to vector<16x32xf32>
    %c0_19 = arith.constant 0 : index
    %c0_20 = arith.constant 0 : index
    %20 = vector.load %arg11[%c0_19, %c0_20] : memref<1x32xf32, #tpu.memory_space<vmem>>, vector<1x32xf32>
    %21 = vector.shape_cast %20 : vector<1x32xf32> to vector<1x32xf32>
    %22 = vector.broadcast %21 : vector<1x32xf32> to vector<16x32xf32>
    %c0_21 = arith.constant 0 : index
    %c0_22 = arith.constant 0 : index
    %23 = vector.load %arg12[%c0_21, %c0_22] : memref<1x32xf32, #tpu.memory_space<vmem>>, vector<1x32xf32>
    %24 = vector.shape_cast %23 : vector<1x32xf32> to vector<1x32xf32>
    %25 = vector.broadcast %24 : vector<1x32xf32> to vector<16x32xf32>
    %26 = tpu.iota {dimensions = array<i32: 0>} : vector<8x8xi32>
    %27 = tpu.iota {dimensions = array<i32: 1>} : vector<8x8xi32>
    %28 = arith.cmpi sgt, %27, %26 : vector<8x8xi32>
    %cst = arith.constant -1.000000e+30 : f32
    %cst_23 = arith.constant 0.000000e+00 : f32
    %29 = vector.broadcast %cst : f32 to vector<8x8xf32>
    %30 = vector.broadcast %cst_23 : f32 to vector<8x8xf32>
    %31 = arith.select %28, %29, %30 : vector<8x8xi1>, vector<8x8xf32>
    %32 = vector.shape_cast %31 : vector<8x8xf32> to vector<1x8x8xf32>
    %33 = vector.shape_cast %32 : vector<1x8x8xf32> to vector<1x8x8xf32>
    %34 = vector.broadcast %33 : vector<1x8x8xf32> to vector<2x8x8xf32>
    %cst_24 = arith.constant dense<0.000000e+00> : vector<16x96xf32>
    %35 = tpu.matmul %0, %2, %cst_24 {dimension_numbers = #tpu.dot_dimension_numbers<[1], [0], [0], [1], [0, 0, 1, 1], [], []>} : vector<16x32xf32>, vector<32x96xf32>, vector<16x96xf32> -> vector<16x96xf32>
    %36 = arith.addf %35, %10 : vector<16x96xf32>
    %37 = vector.extract_strided_slice %36 {offsets = [0, 0], sizes = [16, 32], strides = [1, 1]} : vector<16x96xf32> to vector<16x32xf32>
    %38 = vector.extract_strided_slice %36 {offsets = [0, 32], sizes = [16, 32], strides = [1, 1]} : vector<16x96xf32> to vector<16x32xf32>
    %39 = vector.extract_strided_slice %36 {offsets = [0, 64], sizes = [16, 32], strides = [1, 1]} : vector<16x96xf32> to vector<16x32xf32>
    %40 = vector.extract_strided_slice %37 {offsets = [0, 0], sizes = [16, 8], strides = [1, 1]} : vector<16x32xf32> to vector<16x8xf32>
    %41 = vector.shape_cast %40 : vector<16x8xf32> to vector<2x8x8xf32>
    %42 = vector.extract_strided_slice %38 {offsets = [0, 0], sizes = [16, 8], strides = [1, 1]} : vector<16x32xf32> to vector<16x8xf32>
    %43 = vector.shape_cast %42 : vector<16x8xf32> to vector<2x8x8xf32>
    %44 = vector.extract_strided_slice %39 {offsets = [0, 0], sizes = [16, 8], strides = [1, 1]} : vector<16x32xf32> to vector<16x8xf32>
    %45 = vector.shape_cast %44 : vector<16x8xf32> to vector<2x8x8xf32>
    "tpu.trace_start"() <{level = 10 : i32, message = "bqd,bkd->bqk"}> : () -> ()
    %cst_25 = arith.constant dense<0.000000e+00> : vector<2x8x8xf32>
    %46 = tpu.matmul %41, %43, %cst_25 {dimension_numbers = #tpu.dot_dimension_numbers<[2], [2], [1], [1], [0, 0, 0, 1, 1, 1], [0], [0]>} : vector<2x8x8xf32>, vector<2x8x8xf32>, vector<2x8x8xf32> -> vector<2x8x8xf32>
    "tpu.trace_stop"() : () -> ()
    %cst_26 = arith.constant 0.353553385 : f32
    %47 = vector.broadcast %cst_26 : f32 to vector<2x8x8xf32>
    %48 = arith.mulf %46, %47 : vector<2x8x8xf32>
    %49 = arith.addf %48, %34 : vector<2x8x8xf32>
    %cst_27 = arith.constant dense<0xFF800000> : vector<2x8xf32>
    %50 = vector.multi_reduction <maximumf>, %49, %cst_27 [2] : vector<2x8x8xf32> to vector<2x8xf32>
    %51 = vector.shape_cast %50 : vector<2x8xf32> to vector<2x8x1xf32>
    %52 = vector.broadcast %51 : vector<2x8x1xf32> to vector<2x8x8xf32>
    %53 = arith.subf %49, %52 : vector<2x8x8xf32>
    %54 = math.exp %53 : vector<2x8x8xf32>
    %cst_28 = arith.constant dense<0.000000e+00> : vector<2x8xf32>
    %55 = vector.multi_reduction <add>, %54, %cst_28 [2] : vector<2x8x8xf32> to vector<2x8xf32>
    %56 = vector.shape_cast %55 : vector<2x8xf32> to vector<2x8x1xf32>
    %57 = tpu.reciprocal %56 {approx = true} : vector<2x8x1xf32> -> vector<2x8x1xf32>
    %58 = vector.broadcast %57 : vector<2x8x1xf32> to vector<2x8x8xf32>
    %59 = arith.mulf %54, %58 : vector<2x8x8xf32>
    "tpu.trace_start"() <{level = 10 : i32, message = "bqk,bkd->bqd"}> : () -> ()
    %cst_29 = arith.constant dense<0.000000e+00> : vector<2x8x8xf32>
    %60 = tpu.matmul %59, %45, %cst_29 {dimension_numbers = #tpu.dot_dimension_numbers<[2], [1], [1], [2], [0, 0, 0, 1, 1, 2], [0], [0]>} : vector<2x8x8xf32>, vector<2x8x8xf32>, vector<2x8x8xf32> -> vector<2x8x8xf32>
    "tpu.trace_stop"() : () -> ()
    %61 = vector.shape_cast %60 : vector<2x8x8xf32> to vector<16x8xf32>
    %62 = vector.extract_strided_slice %3 {offsets = [0, 0], sizes = [8, 32], strides = [1, 1]} : vector<32x32xf32> to vector<8x32xf32>
    %cst_30 = arith.constant dense<0.000000e+00> : vector<16x32xf32>
    %63 = tpu.matmul %61, %62, %cst_30 {dimension_numbers = #tpu.dot_dimension_numbers<[1], [0], [0], [1], [0, 0, 1, 1], [], []>} : vector<16x8xf32>, vector<8x32xf32>, vector<16x32xf32> -> vector<16x32xf32>
    %64 = vector.extract_strided_slice %37 {offsets = [0, 8], sizes = [16, 8], strides = [1, 1]} : vector<16x32xf32> to vector<16x8xf32>
    %65 = vector.shape_cast %64 : vector<16x8xf32> to vector<2x8x8xf32>
    %66 = vector.extract_strided_slice %38 {offsets = [0, 8], sizes = [16, 8], strides = [1, 1]} : vector<16x32xf32> to vector<16x8xf32>
    %67 = vector.shape_cast %66 : vector<16x8xf32> to vector<2x8x8xf32>
    %68 = vector.extract_strided_slice %39 {offsets = [0, 8], sizes = [16, 8], strides = [1, 1]} : vector<16x32xf32> to vector<16x8xf32>
    %69 = vector.shape_cast %68 : vector<16x8xf32> to vector<2x8x8xf32>
    "tpu.trace_start"() <{level = 10 : i32, message = "bqd,bkd->bqk"}> : () -> ()
    %cst_31 = arith.constant dense<0.000000e+00> : vector<2x8x8xf32>
    %70 = tpu.matmul %65, %67, %cst_31 {dimension_numbers = #tpu.dot_dimension_numbers<[2], [2], [1], [1], [0, 0, 0, 1, 1, 1], [0], [0]>} : vector<2x8x8xf32>, vector<2x8x8xf32>, vector<2x8x8xf32> -> vector<2x8x8xf32>
    "tpu.trace_stop"() : () -> ()
    %cst_32 = arith.constant 0.353553385 : f32
    %71 = vector.broadcast %cst_32 : f32 to vector<2x8x8xf32>
    %72 = arith.mulf %70, %71 : vector<2x8x8xf32>
    %73 = arith.addf %72, %34 : vector<2x8x8xf32>
    %cst_33 = arith.constant dense<0xFF800000> : vector<2x8xf32>
    %74 = vector.multi_reduction <maximumf>, %73, %cst_33 [2] : vector<2x8x8xf32> to vector<2x8xf32>
    %75 = vector.shape_cast %74 : vector<2x8xf32> to vector<2x8x1xf32>
    %76 = vector.broadcast %75 : vector<2x8x1xf32> to vector<2x8x8xf32>
    %77 = arith.subf %73, %76 : vector<2x8x8xf32>
    %78 = math.exp %77 : vector<2x8x8xf32>
    %cst_34 = arith.constant dense<0.000000e+00> : vector<2x8xf32>
    %79 = vector.multi_reduction <add>, %78, %cst_34 [2] : vector<2x8x8xf32> to vector<2x8xf32>
    %80 = vector.shape_cast %79 : vector<2x8xf32> to vector<2x8x1xf32>
    %81 = tpu.reciprocal %80 {approx = true} : vector<2x8x1xf32> -> vector<2x8x1xf32>
    %82 = vector.broadcast %81 : vector<2x8x1xf32> to vector<2x8x8xf32>
    %83 = arith.mulf %78, %82 : vector<2x8x8xf32>
    "tpu.trace_start"() <{level = 10 : i32, message = "bqk,bkd->bqd"}> : () -> ()
    %cst_35 = arith.constant dense<0.000000e+00> : vector<2x8x8xf32>
    %84 = tpu.matmul %83, %69, %cst_35 {dimension_numbers = #tpu.dot_dimension_numbers<[2], [1], [1], [2], [0, 0, 0, 1, 1, 2], [0], [0]>} : vector<2x8x8xf32>, vector<2x8x8xf32>, vector<2x8x8xf32> -> vector<2x8x8xf32>
    "tpu.trace_stop"() : () -> ()
    %85 = vector.shape_cast %84 : vector<2x8x8xf32> to vector<16x8xf32>
    %86 = vector.extract_strided_slice %3 {offsets = [8, 0], sizes = [8, 32], strides = [1, 1]} : vector<32x32xf32> to vector<8x32xf32>
    %cst_36 = arith.constant dense<0.000000e+00> : vector<16x32xf32>
    %87 = tpu.matmul %85, %86, %cst_36 {dimension_numbers = #tpu.dot_dimension_numbers<[1], [0], [0], [1], [0, 0, 1, 1], [], []>} : vector<16x8xf32>, vector<8x32xf32>, vector<16x32xf32> -> vector<16x32xf32>
    %88 = arith.addf %63, %87 : vector<16x32xf32>
    %89 = vector.extract_strided_slice %37 {offsets = [0, 16], sizes = [16, 8], strides = [1, 1]} : vector<16x32xf32> to vector<16x8xf32>
    %90 = vector.shape_cast %89 : vector<16x8xf32> to vector<2x8x8xf32>
    %91 = vector.extract_strided_slice %38 {offsets = [0, 16], sizes = [16, 8], strides = [1, 1]} : vector<16x32xf32> to vector<16x8xf32>
    %92 = vector.shape_cast %91 : vector<16x8xf32> to vector<2x8x8xf32>
    %93 = vector.extract_strided_slice %39 {offsets = [0, 16], sizes = [16, 8], strides = [1, 1]} : vector<16x32xf32> to vector<16x8xf32>
    %94 = vector.shape_cast %93 : vector<16x8xf32> to vector<2x8x8xf32>
    "tpu.trace_start"() <{level = 10 : i32, message = "bqd,bkd->bqk"}> : () -> ()
    %cst_37 = arith.constant dense<0.000000e+00> : vector<2x8x8xf32>
    %95 = tpu.matmul %90, %92, %cst_37 {dimension_numbers = #tpu.dot_dimension_numbers<[2], [2], [1], [1], [0, 0, 0, 1, 1, 1], [0], [0]>} : vector<2x8x8xf32>, vector<2x8x8xf32>, vector<2x8x8xf32> -> vector<2x8x8xf32>
    "tpu.trace_stop"() : () -> ()
    %cst_38 = arith.constant 0.353553385 : f32
    %96 = vector.broadcast %cst_38 : f32 to vector<2x8x8xf32>
    %97 = arith.mulf %95, %96 : vector<2x8x8xf32>
    %98 = arith.addf %97, %34 : vector<2x8x8xf32>
    %cst_39 = arith.constant dense<0xFF800000> : vector<2x8xf32>
    %99 = vector.multi_reduction <maximumf>, %98, %cst_39 [2] : vector<2x8x8xf32> to vector<2x8xf32>
    %100 = vector.shape_cast %99 : vector<2x8xf32> to vector<2x8x1xf32>
    %101 = vector.broadcast %100 : vector<2x8x1xf32> to vector<2x8x8xf32>
    %102 = arith.subf %98, %101 : vector<2x8x8xf32>
    %103 = math.exp %102 : vector<2x8x8xf32>
    %cst_40 = arith.constant dense<0.000000e+00> : vector<2x8xf32>
    %104 = vector.multi_reduction <add>, %103, %cst_40 [2] : vector<2x8x8xf32> to vector<2x8xf32>
    %105 = vector.shape_cast %104 : vector<2x8xf32> to vector<2x8x1xf32>
    %106 = tpu.reciprocal %105 {approx = true} : vector<2x8x1xf32> -> vector<2x8x1xf32>
    %107 = vector.broadcast %106 : vector<2x8x1xf32> to vector<2x8x8xf32>
    %108 = arith.mulf %103, %107 : vector<2x8x8xf32>
    "tpu.trace_start"() <{level = 10 : i32, message = "bqk,bkd->bqd"}> : () -> ()
    %cst_41 = arith.constant dense<0.000000e+00> : vector<2x8x8xf32>
    %109 = tpu.matmul %108, %94, %cst_41 {dimension_numbers = #tpu.dot_dimension_numbers<[2], [1], [1], [2], [0, 0, 0, 1, 1, 2], [0], [0]>} : vector<2x8x8xf32>, vector<2x8x8xf32>, vector<2x8x8xf32> -> vector<2x8x8xf32>
    "tpu.trace_stop"() : () -> ()
    %110 = vector.shape_cast %109 : vector<2x8x8xf32> to vector<16x8xf32>
    %111 = vector.extract_strided_slice %3 {offsets = [16, 0], sizes = [8, 32], strides = [1, 1]} : vector<32x32xf32> to vector<8x32xf32>
    %cst_42 = arith.constant dense<0.000000e+00> : vector<16x32xf32>
    %112 = tpu.matmul %110, %111, %cst_42 {dimension_numbers = #tpu.dot_dimension_numbers<[1], [0], [0], [1], [0, 0, 1, 1], [], []>} : vector<16x8xf32>, vector<8x32xf32>, vector<16x32xf32> -> vector<16x32xf32>
    %113 = arith.addf %88, %112 : vector<16x32xf32>
    %114 = vector.extract_strided_slice %37 {offsets = [0, 24], sizes = [16, 8], strides = [1, 1]} : vector<16x32xf32> to vector<16x8xf32>
    %115 = vector.shape_cast %114 : vector<16x8xf32> to vector<2x8x8xf32>
    %116 = vector.extract_strided_slice %38 {offsets = [0, 24], sizes = [16, 8], strides = [1, 1]} : vector<16x32xf32> to vector<16x8xf32>
    %117 = vector.shape_cast %116 : vector<16x8xf32> to vector<2x8x8xf32>
    %118 = vector.extract_strided_slice %39 {offsets = [0, 24], sizes = [16, 8], strides = [1, 1]} : vector<16x32xf32> to vector<16x8xf32>
    %119 = vector.shape_cast %118 : vector<16x8xf32> to vector<2x8x8xf32>
    "tpu.trace_start"() <{level = 10 : i32, message = "bqd,bkd->bqk"}> : () -> ()
    %cst_43 = arith.constant dense<0.000000e+00> : vector<2x8x8xf32>
    %120 = tpu.matmul %115, %117, %cst_43 {dimension_numbers = #tpu.dot_dimension_numbers<[2], [2], [1], [1], [0, 0, 0, 1, 1, 1], [0], [0]>} : vector<2x8x8xf32>, vector<2x8x8xf32>, vector<2x8x8xf32> -> vector<2x8x8xf32>
    "tpu.trace_stop"() : () -> ()
    %cst_44 = arith.constant 0.353553385 : f32
    %121 = vector.broadcast %cst_44 : f32 to vector<2x8x8xf32>
    %122 = arith.mulf %120, %121 : vector<2x8x8xf32>
    %123 = arith.addf %122, %34 : vector<2x8x8xf32>
    %cst_45 = arith.constant dense<0xFF800000> : vector<2x8xf32>
    %124 = vector.multi_reduction <maximumf>, %123, %cst_45 [2] : vector<2x8x8xf32> to vector<2x8xf32>
    %125 = vector.shape_cast %124 : vector<2x8xf32> to vector<2x8x1xf32>
    %126 = vector.broadcast %125 : vector<2x8x1xf32> to vector<2x8x8xf32>
    %127 = arith.subf %123, %126 : vector<2x8x8xf32>
    %128 = math.exp %127 : vector<2x8x8xf32>
    %cst_46 = arith.constant dense<0.000000e+00> : vector<2x8xf32>
    %129 = vector.multi_reduction <add>, %128, %cst_46 [2] : vector<2x8x8xf32> to vector<2x8xf32>
    %130 = vector.shape_cast %129 : vector<2x8xf32> to vector<2x8x1xf32>
    %131 = tpu.reciprocal %130 {approx = true} : vector<2x8x1xf32> -> vector<2x8x1xf32>
    %132 = vector.broadcast %131 : vector<2x8x1xf32> to vector<2x8x8xf32>
    %133 = arith.mulf %128, %132 : vector<2x8x8xf32>
    "tpu.trace_start"() <{level = 10 : i32, message = "bqk,bkd->bqd"}> : () -> ()
    %cst_47 = arith.constant dense<0.000000e+00> : vector<2x8x8xf32>
    %134 = tpu.matmul %133, %119, %cst_47 {dimension_numbers = #tpu.dot_dimension_numbers<[2], [1], [1], [2], [0, 0, 0, 1, 1, 2], [0], [0]>} : vector<2x8x8xf32>, vector<2x8x8xf32>, vector<2x8x8xf32> -> vector<2x8x8xf32>
    "tpu.trace_stop"() : () -> ()
    %135 = vector.shape_cast %134 : vector<2x8x8xf32> to vector<16x8xf32>
    %136 = vector.extract_strided_slice %3 {offsets = [24, 0], sizes = [8, 32], strides = [1, 1]} : vector<32x32xf32> to vector<8x32xf32>
    %cst_48 = arith.constant dense<0.000000e+00> : vector<16x32xf32>
    %137 = tpu.matmul %135, %136, %cst_48 {dimension_numbers = #tpu.dot_dimension_numbers<[1], [0], [0], [1], [0, 0, 1, 1], [], []>} : vector<16x8xf32>, vector<8x32xf32>, vector<16x32xf32> -> vector<16x32xf32>
    %138 = arith.addf %113, %137 : vector<16x32xf32>
    %139 = arith.addf %138, %13 : vector<16x32xf32>
    %140 = arith.addf %139, %0 : vector<16x32xf32>
    %cst_49 = arith.constant dense<0.000000e+00> : vector<16xf32>
    %141 = vector.multi_reduction <add>, %140, %cst_49 [1] : vector<16x32xf32> to vector<16xf32>
    %142 = vector.shape_cast %141 : vector<16xf32> to vector<16x1xf32>
    %cst_50 = arith.constant 3.200000e+01 : f32
    %143 = vector.broadcast %cst_50 : f32 to vector<16x1xf32>
    %144 = arith.divf %142, %143 : vector<16x1xf32>
    %145 = vector.broadcast %144 : vector<16x1xf32> to vector<16x32xf32>
    %146 = arith.subf %140, %145 : vector<16x32xf32>
    %147 = vector.broadcast %144 : vector<16x1xf32> to vector<16x32xf32>
    %148 = arith.subf %140, %147 : vector<16x32xf32>
    %149 = arith.mulf %146, %148 : vector<16x32xf32>
    %cst_51 = arith.constant dense<0.000000e+00> : vector<16xf32>
    %150 = vector.multi_reduction <add>, %149, %cst_51 [1] : vector<16x32xf32> to vector<16xf32>
    %151 = vector.shape_cast %150 : vector<16xf32> to vector<16x1xf32>
    %cst_52 = arith.constant 3.200000e+01 : f32
    %152 = vector.broadcast %cst_52 : f32 to vector<16x1xf32>
    %153 = arith.divf %151, %152 : vector<16x1xf32>
    %154 = vector.broadcast %144 : vector<16x1xf32> to vector<16x32xf32>
    %155 = arith.subf %140, %154 : vector<16x32xf32>
    %cst_53 = arith.constant 9.99999974E-6 : f32
    %156 = vector.broadcast %cst_53 : f32 to vector<16x1xf32>
    %157 = arith.addf %153, %156 : vector<16x1xf32>
    %158 = math.rsqrt %157 : vector<16x1xf32>
    %159 = vector.broadcast %158 : vector<16x1xf32> to vector<16x32xf32>
    %160 = arith.mulf %155, %159 : vector<16x32xf32>
    %161 = arith.mulf %160, %22 : vector<16x32xf32>
    %162 = arith.addf %161, %25 : vector<16x32xf32>
    %cst_54 = arith.constant dense<0.000000e+00> : vector<16x32xf32>
    %163 = tpu.matmul %162, %6, %cst_54 {dimension_numbers = #tpu.dot_dimension_numbers<[1], [0], [0], [1], [0, 0, 1, 1], [], []>} : vector<16x32xf32>, vector<32x32xf32>, vector<16x32xf32> -> vector<16x32xf32>
    %164 = vector.extract_strided_slice %10 {offsets = [0, 0], sizes = [16, 32], strides = [1, 1]} : vector<16x96xf32> to vector<16x32xf32>
    %165 = arith.addf %163, %164 : vector<16x32xf32>
    %cst_55 = arith.constant dense<0.000000e+00> : vector<16x64xf32>
    %166 = tpu.matmul %1, %7, %cst_55 {dimension_numbers = #tpu.dot_dimension_numbers<[1], [0], [0], [1], [0, 0, 1, 1], [], []>} : vector<16x32xf32>, vector<32x64xf32>, vector<16x64xf32> -> vector<16x64xf32>
    %167 = vector.extract_strided_slice %10 {offsets = [0, 32], sizes = [16, 64], strides = [1, 1]} : vector<16x96xf32> to vector<16x64xf32>
    %168 = arith.addf %166, %167 : vector<16x64xf32>
    %169 = vector.extract_strided_slice %168 {offsets = [0, 0], sizes = [16, 32], strides = [1, 1]} : vector<16x64xf32> to vector<16x32xf32>
    %170 = vector.extract_strided_slice %168 {offsets = [0, 32], sizes = [16, 32], strides = [1, 1]} : vector<16x64xf32> to vector<16x32xf32>
    %171 = vector.extract_strided_slice %165 {offsets = [0, 0], sizes = [16, 8], strides = [1, 1]} : vector<16x32xf32> to vector<16x8xf32>
    %172 = vector.shape_cast %171 : vector<16x8xf32> to vector<2x8x8xf32>
    %173 = vector.extract_strided_slice %169 {offsets = [0, 0], sizes = [16, 8], strides = [1, 1]} : vector<16x32xf32> to vector<16x8xf32>
    %174 = vector.shape_cast %173 : vector<16x8xf32> to vector<2x8x8xf32>
    %175 = vector.extract_strided_slice %170 {offsets = [0, 0], sizes = [16, 8], strides = [1, 1]} : vector<16x32xf32> to vector<16x8xf32>
    %176 = vector.shape_cast %175 : vector<16x8xf32> to vector<2x8x8xf32>
    "tpu.trace_start"() <{level = 10 : i32, message = "bqd,bkd->bqk"}> : () -> ()
    %cst_56 = arith.constant dense<0.000000e+00> : vector<2x8x8xf32>
    %177 = tpu.matmul %172, %174, %cst_56 {dimension_numbers = #tpu.dot_dimension_numbers<[2], [2], [1], [1], [0, 0, 0, 1, 1, 1], [0], [0]>} : vector<2x8x8xf32>, vector<2x8x8xf32>, vector<2x8x8xf32> -> vector<2x8x8xf32>
    "tpu.trace_stop"() : () -> ()
    %cst_57 = arith.constant 0.353553385 : f32
    %178 = vector.broadcast %cst_57 : f32 to vector<2x8x8xf32>
    %179 = arith.mulf %177, %178 : vector<2x8x8xf32>
    %180 = arith.addf %179, %34 : vector<2x8x8xf32>
    %cst_58 = arith.constant dense<0xFF800000> : vector<2x8xf32>
    %181 = vector.multi_reduction <maximumf>, %180, %cst_58 [2] : vector<2x8x8xf32> to vector<2x8xf32>
    %182 = vector.shape_cast %181 : vector<2x8xf32> to vector<2x8x1xf32>
    %183 = vector.broadcast %182 : vector<2x8x1xf32> to vector<2x8x8xf32>
    %184 = arith.subf %180, %183 : vector<2x8x8xf32>
    %185 = math.exp %184 : vector<2x8x8xf32>
    %cst_59 = arith.constant dense<0.000000e+00> : vector<2x8xf32>
    %186 = vector.multi_reduction <add>, %185, %cst_59 [2] : vector<2x8x8xf32> to vector<2x8xf32>
    %187 = vector.shape_cast %186 : vector<2x8xf32> to vector<2x8x1xf32>
    %188 = tpu.reciprocal %187 {approx = true} : vector<2x8x1xf32> -> vector<2x8x1xf32>
    %189 = vector.broadcast %188 : vector<2x8x1xf32> to vector<2x8x8xf32>
    %190 = arith.mulf %185, %189 : vector<2x8x8xf32>
    "tpu.trace_start"() <{level = 10 : i32, message = "bqk,bkd->bqd"}> : () -> ()
    %cst_60 = arith.constant dense<0.000000e+00> : vector<2x8x8xf32>
    %191 = tpu.matmul %190, %176, %cst_60 {dimension_numbers = #tpu.dot_dimension_numbers<[2], [1], [1], [2], [0, 0, 0, 1, 1, 2], [0], [0]>} : vector<2x8x8xf32>, vector<2x8x8xf32>, vector<2x8x8xf32> -> vector<2x8x8xf32>
    "tpu.trace_stop"() : () -> ()
    %192 = vector.shape_cast %191 : vector<2x8x8xf32> to vector<16x8xf32>
    %193 = vector.extract_strided_slice %3 {offsets = [0, 0], sizes = [8, 32], strides = [1, 1]} : vector<32x32xf32> to vector<8x32xf32>
    %cst_61 = arith.constant dense<0.000000e+00> : vector<16x32xf32>
    %194 = tpu.matmul %192, %193, %cst_61 {dimension_numbers = #tpu.dot_dimension_numbers<[1], [0], [0], [1], [0, 0, 1, 1], [], []>} : vector<16x8xf32>, vector<8x32xf32>, vector<16x32xf32> -> vector<16x32xf32>
    %195 = vector.extract_strided_slice %165 {offsets = [0, 8], sizes = [16, 8], strides = [1, 1]} : vector<16x32xf32> to vector<16x8xf32>
    %196 = vector.shape_cast %195 : vector<16x8xf32> to vector<2x8x8xf32>
    %197 = vector.extract_strided_slice %169 {offsets = [0, 8], sizes = [16, 8], strides = [1, 1]} : vector<16x32xf32> to vector<16x8xf32>
    %198 = vector.shape_cast %197 : vector<16x8xf32> to vector<2x8x8xf32>
    %199 = vector.extract_strided_slice %170 {offsets = [0, 8], sizes = [16, 8], strides = [1, 1]} : vector<16x32xf32> to vector<16x8xf32>
    %200 = vector.shape_cast %199 : vector<16x8xf32> to vector<2x8x8xf32>
    "tpu.trace_start"() <{level = 10 : i32, message = "bqd,bkd->bqk"}> : () -> ()
    %cst_62 = arith.constant dense<0.000000e+00> : vector<2x8x8xf32>
    %201 = tpu.matmul %196, %198, %cst_62 {dimension_numbers = #tpu.dot_dimension_numbers<[2], [2], [1], [1], [0, 0, 0, 1, 1, 1], [0], [0]>} : vector<2x8x8xf32>, vector<2x8x8xf32>, vector<2x8x8xf32> -> vector<2x8x8xf32>
    "tpu.trace_stop"() : () -> ()
    %cst_63 = arith.constant 0.353553385 : f32
    %202 = vector.broadcast %cst_63 : f32 to vector<2x8x8xf32>
    %203 = arith.mulf %201, %202 : vector<2x8x8xf32>
    %204 = arith.addf %203, %34 : vector<2x8x8xf32>
    %cst_64 = arith.constant dense<0xFF800000> : vector<2x8xf32>
    %205 = vector.multi_reduction <maximumf>, %204, %cst_64 [2] : vector<2x8x8xf32> to vector<2x8xf32>
    %206 = vector.shape_cast %205 : vector<2x8xf32> to vector<2x8x1xf32>
    %207 = vector.broadcast %206 : vector<2x8x1xf32> to vector<2x8x8xf32>
    %208 = arith.subf %204, %207 : vector<2x8x8xf32>
    %209 = math.exp %208 : vector<2x8x8xf32>
    %cst_65 = arith.constant dense<0.000000e+00> : vector<2x8xf32>
    %210 = vector.multi_reduction <add>, %209, %cst_65 [2] : vector<2x8x8xf32> to vector<2x8xf32>
    %211 = vector.shape_cast %210 : vector<2x8xf32> to vector<2x8x1xf32>
    %212 = tpu.reciprocal %211 {approx = true} : vector<2x8x1xf32> -> vector<2x8x1xf32>
    %213 = vector.broadcast %212 : vector<2x8x1xf32> to vector<2x8x8xf32>
    %214 = arith.mulf %209, %213 : vector<2x8x8xf32>
    "tpu.trace_start"() <{level = 10 : i32, message = "bqk,bkd->bqd"}> : () -> ()
    %cst_66 = arith.constant dense<0.000000e+00> : vector<2x8x8xf32>
    %215 = tpu.matmul %214, %200, %cst_66 {dimension_numbers = #tpu.dot_dimension_numbers<[2], [1], [1], [2], [0, 0, 0, 1, 1, 2], [0], [0]>} : vector<2x8x8xf32>, vector<2x8x8xf32>, vector<2x8x8xf32> -> vector<2x8x8xf32>
    "tpu.trace_stop"() : () -> ()
    %216 = vector.shape_cast %215 : vector<2x8x8xf32> to vector<16x8xf32>
    %217 = vector.extract_strided_slice %3 {offsets = [8, 0], sizes = [8, 32], strides = [1, 1]} : vector<32x32xf32> to vector<8x32xf32>
    %cst_67 = arith.constant dense<0.000000e+00> : vector<16x32xf32>
    %218 = tpu.matmul %216, %217, %cst_67 {dimension_numbers = #tpu.dot_dimension_numbers<[1], [0], [0], [1], [0, 0, 1, 1], [], []>} : vector<16x8xf32>, vector<8x32xf32>, vector<16x32xf32> -> vector<16x32xf32>
    %219 = arith.addf %194, %218 : vector<16x32xf32>
    %220 = vector.extract_strided_slice %165 {offsets = [0, 16], sizes = [16, 8], strides = [1, 1]} : vector<16x32xf32> to vector<16x8xf32>
    %221 = vector.shape_cast %220 : vector<16x8xf32> to vector<2x8x8xf32>
    %222 = vector.extract_strided_slice %169 {offsets = [0, 16], sizes = [16, 8], strides = [1, 1]} : vector<16x32xf32> to vector<16x8xf32>
    %223 = vector.shape_cast %222 : vector<16x8xf32> to vector<2x8x8xf32>
    %224 = vector.extract_strided_slice %170 {offsets = [0, 16], sizes = [16, 8], strides = [1, 1]} : vector<16x32xf32> to vector<16x8xf32>
    %225 = vector.shape_cast %224 : vector<16x8xf32> to vector<2x8x8xf32>
    "tpu.trace_start"() <{level = 10 : i32, message = "bqd,bkd->bqk"}> : () -> ()
    %cst_68 = arith.constant dense<0.000000e+00> : vector<2x8x8xf32>
    %226 = tpu.matmul %221, %223, %cst_68 {dimension_numbers = #tpu.dot_dimension_numbers<[2], [2], [1], [1], [0, 0, 0, 1, 1, 1], [0], [0]>} : vector<2x8x8xf32>, vector<2x8x8xf32>, vector<2x8x8xf32> -> vector<2x8x8xf32>
    "tpu.trace_stop"() : () -> ()
    %cst_69 = arith.constant 0.353553385 : f32
    %227 = vector.broadcast %cst_69 : f32 to vector<2x8x8xf32>
    %228 = arith.mulf %226, %227 : vector<2x8x8xf32>
    %229 = arith.addf %228, %34 : vector<2x8x8xf32>
    %cst_70 = arith.constant dense<0xFF800000> : vector<2x8xf32>
    %230 = vector.multi_reduction <maximumf>, %229, %cst_70 [2] : vector<2x8x8xf32> to vector<2x8xf32>
    %231 = vector.shape_cast %230 : vector<2x8xf32> to vector<2x8x1xf32>
    %232 = vector.broadcast %231 : vector<2x8x1xf32> to vector<2x8x8xf32>
    %233 = arith.subf %229, %232 : vector<2x8x8xf32>
    %234 = math.exp %233 : vector<2x8x8xf32>
    %cst_71 = arith.constant dense<0.000000e+00> : vector<2x8xf32>
    %235 = vector.multi_reduction <add>, %234, %cst_71 [2] : vector<2x8x8xf32> to vector<2x8xf32>
    %236 = vector.shape_cast %235 : vector<2x8xf32> to vector<2x8x1xf32>
    %237 = tpu.reciprocal %236 {approx = true} : vector<2x8x1xf32> -> vector<2x8x1xf32>
    %238 = vector.broadcast %237 : vector<2x8x1xf32> to vector<2x8x8xf32>
    %239 = arith.mulf %234, %238 : vector<2x8x8xf32>
    "tpu.trace_start"() <{level = 10 : i32, message = "bqk,bkd->bqd"}> : () -> ()
    %cst_72 = arith.constant dense<0.000000e+00> : vector<2x8x8xf32>
    %240 = tpu.matmul %239, %225, %cst_72 {dimension_numbers = #tpu.dot_dimension_numbers<[2], [1], [1], [2], [0, 0, 0, 1, 1, 2], [0], [0]>} : vector<2x8x8xf32>, vector<2x8x8xf32>, vector<2x8x8xf32> -> vector<2x8x8xf32>
    "tpu.trace_stop"() : () -> ()
    %241 = vector.shape_cast %240 : vector<2x8x8xf32> to vector<16x8xf32>
    %242 = vector.extract_strided_slice %3 {offsets = [16, 0], sizes = [8, 32], strides = [1, 1]} : vector<32x32xf32> to vector<8x32xf32>
    %cst_73 = arith.constant dense<0.000000e+00> : vector<16x32xf32>
    %243 = tpu.matmul %241, %242, %cst_73 {dimension_numbers = #tpu.dot_dimension_numbers<[1], [0], [0], [1], [0, 0, 1, 1], [], []>} : vector<16x8xf32>, vector<8x32xf32>, vector<16x32xf32> -> vector<16x32xf32>
    %244 = arith.addf %219, %243 : vector<16x32xf32>
    %245 = vector.extract_strided_slice %165 {offsets = [0, 24], sizes = [16, 8], strides = [1, 1]} : vector<16x32xf32> to vector<16x8xf32>
    %246 = vector.shape_cast %245 : vector<16x8xf32> to vector<2x8x8xf32>
    %247 = vector.extract_strided_slice %169 {offsets = [0, 24], sizes = [16, 8], strides = [1, 1]} : vector<16x32xf32> to vector<16x8xf32>
    %248 = vector.shape_cast %247 : vector<16x8xf32> to vector<2x8x8xf32>
    %249 = vector.extract_strided_slice %170 {offsets = [0, 24], sizes = [16, 8], strides = [1, 1]} : vector<16x32xf32> to vector<16x8xf32>
    %250 = vector.shape_cast %249 : vector<16x8xf32> to vector<2x8x8xf32>
    "tpu.trace_start"() <{level = 10 : i32, message = "bqd,bkd->bqk"}> : () -> ()
    %cst_74 = arith.constant dense<0.000000e+00> : vector<2x8x8xf32>
    %251 = tpu.matmul %246, %248, %cst_74 {dimension_numbers = #tpu.dot_dimension_numbers<[2], [2], [1], [1], [0, 0, 0, 1, 1, 1], [0], [0]>} : vector<2x8x8xf32>, vector<2x8x8xf32>, vector<2x8x8xf32> -> vector<2x8x8xf32>
    "tpu.trace_stop"() : () -> ()
    %cst_75 = arith.constant 0.353553385 : f32
    %252 = vector.broadcast %cst_75 : f32 to vector<2x8x8xf32>
    %253 = arith.mulf %251, %252 : vector<2x8x8xf32>
    %254 = arith.addf %253, %34 : vector<2x8x8xf32>
    %cst_76 = arith.constant dense<0xFF800000> : vector<2x8xf32>
    %255 = vector.multi_reduction <maximumf>, %254, %cst_76 [2] : vector<2x8x8xf32> to vector<2x8xf32>
    %256 = vector.shape_cast %255 : vector<2x8xf32> to vector<2x8x1xf32>
    %257 = vector.broadcast %256 : vector<2x8x1xf32> to vector<2x8x8xf32>
    %258 = arith.subf %254, %257 : vector<2x8x8xf32>
    %259 = math.exp %258 : vector<2x8x8xf32>
    %cst_77 = arith.constant dense<0.000000e+00> : vector<2x8xf32>
    %260 = vector.multi_reduction <add>, %259, %cst_77 [2] : vector<2x8x8xf32> to vector<2x8xf32>
    %261 = vector.shape_cast %260 : vector<2x8xf32> to vector<2x8x1xf32>
    %262 = tpu.reciprocal %261 {approx = true} : vector<2x8x1xf32> -> vector<2x8x1xf32>
    %263 = vector.broadcast %262 : vector<2x8x1xf32> to vector<2x8x8xf32>
    %264 = arith.mulf %259, %263 : vector<2x8x8xf32>
    "tpu.trace_start"() <{level = 10 : i32, message = "bqk,bkd->bqd"}> : () -> ()
    %cst_78 = arith.constant dense<0.000000e+00> : vector<2x8x8xf32>
    %265 = tpu.matmul %264, %250, %cst_78 {dimension_numbers = #tpu.dot_dimension_numbers<[2], [1], [1], [2], [0, 0, 0, 1, 1, 2], [0], [0]>} : vector<2x8x8xf32>, vector<2x8x8xf32>, vector<2x8x8xf32> -> vector<2x8x8xf32>
    "tpu.trace_stop"() : () -> ()
    %266 = vector.shape_cast %265 : vector<2x8x8xf32> to vector<16x8xf32>
    %267 = vector.extract_strided_slice %3 {offsets = [24, 0], sizes = [8, 32], strides = [1, 1]} : vector<32x32xf32> to vector<8x32xf32>
    %cst_79 = arith.constant dense<0.000000e+00> : vector<16x32xf32>
    %268 = tpu.matmul %266, %267, %cst_79 {dimension_numbers = #tpu.dot_dimension_numbers<[1], [0], [0], [1], [0, 0, 1, 1], [], []>} : vector<16x8xf32>, vector<8x32xf32>, vector<16x32xf32> -> vector<16x32xf32>
    %269 = arith.addf %244, %268 : vector<16x32xf32>
    %270 = arith.addf %269, %13 : vector<16x32xf32>
    %271 = arith.addf %270, %162 : vector<16x32xf32>
    %cst_80 = arith.constant dense<0.000000e+00> : vector<16xf32>
    %272 = vector.multi_reduction <add>, %271, %cst_80 [1] : vector<16x32xf32> to vector<16xf32>
    %273 = vector.shape_cast %272 : vector<16xf32> to vector<16x1xf32>
    %cst_81 = arith.constant 3.200000e+01 : f32
    %274 = vector.broadcast %cst_81 : f32 to vector<16x1xf32>
    %275 = arith.divf %273, %274 : vector<16x1xf32>
    %276 = vector.broadcast %275 : vector<16x1xf32> to vector<16x32xf32>
    %277 = arith.subf %271, %276 : vector<16x32xf32>
    %278 = vector.broadcast %275 : vector<16x1xf32> to vector<16x32xf32>
    %279 = arith.subf %271, %278 : vector<16x32xf32>
    %280 = arith.mulf %277, %279 : vector<16x32xf32>
    %cst_82 = arith.constant dense<0.000000e+00> : vector<16xf32>
    %281 = vector.multi_reduction <add>, %280, %cst_82 [1] : vector<16x32xf32> to vector<16xf32>
    %282 = vector.shape_cast %281 : vector<16xf32> to vector<16x1xf32>
    %cst_83 = arith.constant 3.200000e+01 : f32
    %283 = vector.broadcast %cst_83 : f32 to vector<16x1xf32>
    %284 = arith.divf %282, %283 : vector<16x1xf32>
    %285 = vector.broadcast %275 : vector<16x1xf32> to vector<16x32xf32>
    %286 = arith.subf %271, %285 : vector<16x32xf32>
    %cst_84 = arith.constant 9.99999974E-6 : f32
    %287 = vector.broadcast %cst_84 : f32 to vector<16x1xf32>
    %288 = arith.addf %284, %287 : vector<16x1xf32>
    %289 = math.rsqrt %288 : vector<16x1xf32>
    %290 = vector.broadcast %289 : vector<16x1xf32> to vector<16x32xf32>
    %291 = arith.mulf %286, %290 : vector<16x32xf32>
    %292 = arith.mulf %291, %22 : vector<16x32xf32>
    %293 = arith.addf %292, %25 : vector<16x32xf32>
    %cst_85 = arith.constant dense<0.000000e+00> : vector<16x32xf32>
    %294 = tpu.matmul %293, %4, %cst_85 {dimension_numbers = #tpu.dot_dimension_numbers<[1], [0], [0], [1], [0, 0, 1, 1], [], []>} : vector<16x32xf32>, vector<32x32xf32>, vector<16x32xf32> -> vector<16x32xf32>
    %295 = arith.addf %294, %16 : vector<16x32xf32>
    %cst_86 = arith.constant 0.000000e+00 : f32
    %296 = vector.broadcast %cst_86 : f32 to vector<16x32xf32>
    %297 = arith.maximumf %295, %296 : vector<16x32xf32>
    %cst_87 = arith.constant dense<0.000000e+00> : vector<16x32xf32>
    %298 = tpu.matmul %297, %5, %cst_87 {dimension_numbers = #tpu.dot_dimension_numbers<[1], [0], [0], [1], [0, 0, 1, 1], [], []>} : vector<16x32xf32>, vector<32x32xf32>, vector<16x32xf32> -> vector<16x32xf32>
    %299 = arith.addf %298, %19 : vector<16x32xf32>
    %300 = arith.addf %299, %293 : vector<16x32xf32>
    %cst_88 = arith.constant dense<0.000000e+00> : vector<16xf32>
    %301 = vector.multi_reduction <add>, %300, %cst_88 [1] : vector<16x32xf32> to vector<16xf32>
    %302 = vector.shape_cast %301 : vector<16xf32> to vector<16x1xf32>
    %cst_89 = arith.constant 3.200000e+01 : f32
    %303 = vector.broadcast %cst_89 : f32 to vector<16x1xf32>
    %304 = arith.divf %302, %303 : vector<16x1xf32>
    %305 = vector.broadcast %304 : vector<16x1xf32> to vector<16x32xf32>
    %306 = arith.subf %300, %305 : vector<16x32xf32>
    %307 = vector.broadcast %304 : vector<16x1xf32> to vector<16x32xf32>
    %308 = arith.subf %300, %307 : vector<16x32xf32>
    %309 = arith.mulf %306, %308 : vector<16x32xf32>
    %cst_90 = arith.constant dense<0.000000e+00> : vector<16xf32>
    %310 = vector.multi_reduction <add>, %309, %cst_90 [1] : vector<16x32xf32> to vector<16xf32>
    %311 = vector.shape_cast %310 : vector<16xf32> to vector<16x1xf32>
    %cst_91 = arith.constant 3.200000e+01 : f32
    %312 = vector.broadcast %cst_91 : f32 to vector<16x1xf32>
    %313 = arith.divf %311, %312 : vector<16x1xf32>
    %314 = vector.broadcast %304 : vector<16x1xf32> to vector<16x32xf32>
    %315 = arith.subf %300, %314 : vector<16x32xf32>
    %cst_92 = arith.constant 9.99999974E-6 : f32
    %316 = vector.broadcast %cst_92 : f32 to vector<16x1xf32>
    %317 = arith.addf %313, %316 : vector<16x1xf32>
    %318 = math.rsqrt %317 : vector<16x1xf32>
    %319 = vector.broadcast %318 : vector<16x1xf32> to vector<16x32xf32>
    %320 = arith.mulf %315, %319 : vector<16x32xf32>
    %321 = arith.mulf %320, %22 : vector<16x32xf32>
    %322 = arith.addf %321, %25 : vector<16x32xf32>
    %c0_93 = arith.constant 0 : index
    %c0_94 = arith.constant 0 : index
    %323 = vector.load %arg13[%c0_93, %c0_94] : memref<16x32xf32, #tpu.memory_space<vmem>>, vector<16x32xf32>
    tpu.vector_store %arg13[%c0_93, %c0_94], %322 {strides = array<i32>} : memref<16x32xf32, #tpu.memory_space<vmem>>, vector<16x32xf32>,
    return
  }
  func.func @transform_0(%arg0: i32) -> (i32, i32) {
    %c0_i32 = arith.constant 0 : i32
    %c0_i32_0 = arith.constant 0 : i32
    return %arg0, %c0_i32 : i32, i32
  }
  func.func @transform_1(%arg0: i32) -> (i32, i32) {
    %c0_i32 = arith.constant 0 : i32
    %c0_i32_0 = arith.constant 0 : i32
    return %arg0, %c0_i32 : i32, i32
  }
  func.func @transform_2(%arg0: i32) -> (i32, i32) {
    %c0_i32 = arith.constant 0 : i32
    %c0_i32_0 = arith.constant 0 : i32
    %c0_i32_1 = arith.constant 0 : i32
    return %c0_i32, %c0_i32_0 : i32, i32
  }
  func.func @transform_3(%arg0: i32) -> (i32, i32) {
    %c0_i32 = arith.constant 0 : i32
    %c0_i32_0 = arith.constant 0 : i32
    %c0_i32_1 = arith.constant 0 : i32
    return %c0_i32, %c0_i32_0 : i32, i32
  }
  func.func @transform_4(%arg0: i32) -> (i32, i32) {
    %c0_i32 = arith.constant 0 : i32
    %c0_i32_0 = arith.constant 0 : i32
    %c0_i32_1 = arith.constant 0 : i32
    return %c0_i32, %c0_i32_0 : i32, i32
  }
  func.func @transform_5(%arg0: i32) -> (i32, i32) {
    %c0_i32 = arith.constant 0 : i32
    %c0_i32_0 = arith.constant 0 : i32
    %c0_i32_1 = arith.constant 0 : i32
    return %c0_i32, %c0_i32_0 : i32, i32
  }
  func.func @transform_6(%arg0: i32) -> (i32, i32) {
    %c0_i32 = arith.constant 0 : i32
    %c0_i32_0 = arith.constant 0 : i32
    %c0_i32_1 = arith.constant 0 : i32
    return %c0_i32, %c0_i32_0 : i32, i32
  }
  func.func @transform_7(%arg0: i32) -> (i32, i32) {
    %c0_i32 = arith.constant 0 : i32
    %c0_i32_0 = arith.constant 0 : i32
    %c0_i32_1 = arith.constant 0 : i32
    return %c0_i32, %c0_i32_0 : i32, i32
  }
  func.func @transform_8(%arg0: i32) -> (i32, i32) {
    %c0_i32 = arith.constant 0 : i32
    %c0_i32_0 = arith.constant 0 : i32
    %c0_i32_1 = arith.constant 0 : i32
    return %c0_i32, %c0_i32_0 : i32, i32
  }
  func.func @transform_9(%arg0: i32) -> (i32, i32) {
    %c0_i32 = arith.constant 0 : i32
    %c0_i32_0 = arith.constant 0 : i32
    %c0_i32_1 = arith.constant 0 : i32
    return %c0_i32, %c0_i32_0 : i32, i32
  }
  func.func @transform_10(%arg0: i32) -> (i32, i32) {
    %c0_i32 = arith.constant 0 : i32
    %c0_i32_0 = arith.constant 0 : i32
    %c0_i32_1 = arith.constant 0 : i32
    return %c0_i32, %c0_i32_0 : i32, i32
  }
  func.func @transform_11(%arg0: i32) -> (i32, i32) {
    %c0_i32 = arith.constant 0 : i32
    %c0_i32_0 = arith.constant 0 : i32
    %c0_i32_1 = arith.constant 0 : i32
    return %c0_i32, %c0_i32_0 : i32, i32
  }
  func.func @transform_12(%arg0: i32) -> (i32, i32) {
    %c0_i32 = arith.constant 0 : i32
    %c0_i32_0 = arith.constant 0 : i32
    return %arg0, %c0_i32 : i32, i32
  }
}

</mosaic_0001>

<bundles_post_ra>
// kernel: tpu_custom_call.1
= control target key start
LH: loop header
LB: loop body
LE: loop exit
PB: predicated region body
PF: predicated region fallthrough
CT: control target
= control target key end

     0   :  { %17 = vsyncpa [#allocation3], 0  ;;  %s5518_s0 = inlined_call_operand.hbm [shape: f32[16,32], index: 0, kind: input, shape index: {}]   ;;  %s5519_s1 = inlined_call_operand.hbm [shape: f32[16,32], index: 1, kind: input, shape index: {}]   ;;  %s5520_s2 = inlined_call_operand.hbm [shape: f32[32,96], index: 2, kind: input, shape index: {}]   ;;  %s5521_s3 = inlined_call_operand.vmem [shape: f32[1,96], index: 3, kind: input, shape index: {}]   ;;  %s5522_s4 = inlined_call_operand.hbm [shape: f32[32,32], index: 4, kind: input, shape index: {}]   ;;  %s5523_s5 = inlined_call_operand.vmem [shape: f32[1,32], index: 5, kind: input, shape index: {}]   ;;  %s5524_s6 = inlined_call_operand.hbm [shape: f32[32,32], index: 6, kind: input, shape index: {}]   ;;  %s5525_s7 = inlined_call_operand.vmem [shape: f32[1,32], index: 7, kind: input, shape index: {}]   ;;  %s5526_s8 = inlined_call_operand.hbm [shape: f32[32,32], index: 8, kind: input, shape index: {}]   ;;  %s5527_s9 = inlined_call_operand.vmem [shape: f32[1,32], index: 9, kind: input, shape index: {}]   ;;  %s5528_s10 = inlined_call_operand.vmem [shape: f32[1,32], index: 10, kind: input, shape index: {}]   ;;  %s5529_s11 = inlined_call_operand.vmem [shape: f32[1,32], index: 11, kind: input, shape index: {}]   ;;  %s5530_s12 = inlined_call_operand.hbm [shape: f32[16,32], index: 12, kind: output, shape index: {}]  }
   0x1   :  { %18 = vsyncpa [#allocation6], 0 }
   0x2   :  { %19 = vsyncpa [#allocation9], 0 }
   0x3   :  { %20 = vsyncpa [#allocation12], 0 }
   0x4   :  { %21 = vsyncpa [#allocation4], 0  ;;  %s4842_s21 = smov [#allocation5]   ;;  %s4843_s23 = smov [#allocation8]  }
   0x5   :  { %s39_s22 = sshll.u32 %s4842_s21, 4  ;;  %s65_s24 = sshll.u32 %s4843_s23, 4  ;;  %s40_s22 = int_to_ptr.vmem [resolvable:$true] %s39_s22  ;;  %s4929_s24 = int_to_ptr.vmem [resolvable:$true] %s65_s24 }
   0x6   :  { %s4678_s27 = scalar_lea.hbm %s5519_s1, 256 }
   0x7   :  { %p4679_p0 = scmp.ne.s32.totalorder %s5519_s1, %s4678_s27  ;;  %p4682_p1 = scmp.lt.u32.totalorder %s4678_s27, %s5519_s1 }
   0x9   :  { %p4684_p2 = pnand %p4682_p1, %p4679_p0 }
   0xb   :  { %4687 = shalt.err (!%p4684_p2)
}
   0xc   :  { %s4688_s14 = scalar_lea.vmem %s40_s22, 256  ;;  %p4693_p4 = scmp.lt.s32.totalorder %s40_s22, %s40_s22 }
   0xd   :  { %p4689_p3 = scmp.ne.s32.totalorder %s40_s22, %s4688_s14  ;;  %p4694_p5 = scmp.lt.s32.totalorder %s4688_s14, %s4688_s14 }
   0xf   :  { %p4695_p6 = por %p4694_p5, %p4693_p4 }
  0x11   :  { %p4696_p7 = pnand %p4695_p6, %p4689_p3 }
  0x13   :  { %4699 = shalt.err (!%p4696_p7)
}
  0x14   :  { %s4844_s15 = smov 128   ;;  %s4845_s16 = smov 8  }
  0x15   :  { %45 = dma.hbm_to_vmem [thread:$0]  %s5519_s1, 256, %s40_s22, [#allocation6], %s4844_s15, %s4844_s15, %s4845_s16  }
  0x16   :  { %s4700_s21 = scalar_lea.hbm %s5522_s4, 512 }
  0x17   :  { %p4701_p8 = scmp.ne.s32.totalorder %s5522_s4, %s4700_s21  ;;  %p4704_p9 = scmp.lt.u32.totalorder %s4700_s21, %s5522_s4 }
  0x19   :  { %p4706_p10 = pnand %p4704_p9, %p4701_p8 }
  0x1b   :  { %4709 = shalt.err (!%p4706_p10)
}
  0x1c   :  { %s4710_s28 = scalar_lea.vmem %s4929_s24, 512  ;;  %p4715_p12 = scmp.lt.s32.totalorder %s4929_s24, %s4929_s24 }
  0x1d   :  { %p4711_p11 = scmp.ne.s32.totalorder %s4929_s24, %s4710_s28  ;;  %p4716_p13 = scmp.lt.s32.totalorder %s4710_s28, %s4710_s28 }
  0x1f   :  { %p4717_p0 = por %p4716_p13, %p4715_p12 }
  0x21   :  { %p4718_p1 = pnand %p4717_p0, %p4711_p11 }
  0x23   :  { %4721 = shalt.err (!%p4718_p1)
}
  0x24   :  { %71 = dma.hbm_to_vmem [thread:$0]  %s5522_s4, 512, %s4929_s24, [#allocation9], %s4844_s15, %s4844_s15, %s4845_s16  }
  0x25   :  { %s4846_s29 = smov [#allocation2]   ;;  %s4847_s13 = smov [#allocation7]  }
  0x26   :  { %s27_s30 = sshll.u32 %s4846_s29, 4  ;;  %s51_s14 = sshll.u32 %s4847_s13, 4  ;;  %s28_s30 = int_to_ptr.vmem [resolvable:$true] %s27_s30  ;;  %s4966_s14 = int_to_ptr.vmem [resolvable:$true] %s51_s14 }
  0x27   :  { %s4722_s19 = scalar_lea.hbm %s5518_s0, 256 }
  0x28   :  { %p4723_p2 = scmp.ne.s32.totalorder %s5518_s0, %s4722_s19  ;;  %p4726_p3 = scmp.lt.u32.totalorder %s4722_s19, %s5518_s0 }
  0x2a   :  { %p4728_p4 = pnand %p4726_p3, %p4723_p2 }
  0x2c   :  { %4731 = shalt.err (!%p4728_p4)
}
  0x2d   :  { %s4732_s4 = scalar_lea.vmem %s28_s30, 256  ;;  %p4737_p6 = scmp.lt.s32.totalorder %s28_s30, %s28_s30 }
  0x2e   :  { %p4733_p5 = scmp.ne.s32.totalorder %s28_s30, %s4732_s4  ;;  %p4738_p7 = scmp.lt.s32.totalorder %s4732_s4, %s4732_s4 }
  0x30   :  { %p4739_p8 = por %p4738_p7, %p4737_p6 }
  0x32   :  { %p4740_p9 = pnand %p4739_p8, %p4733_p5 }
  0x34   :  { %4743 = shalt.err (!%p4740_p9)
}
  0x35   :  { %33 = dma.hbm_to_vmem [thread:$0]  %s5518_s0, 256, %s28_s30, [#allocation3], %s4844_s15, %s4844_s15, %s4845_s16  }
  0x36   :  { %s4744_s1 = scalar_lea.hbm %s5520_s2, 512 }
  0x37   :  { %p4745_p10 = scmp.ne.s32.totalorder %s5520_s2, %s4744_s1  ;;  %p4748_p11 = scmp.lt.u32.totalorder %s4744_s1, %s5520_s2 }
  0x39   :  { %p4750_p12 = pnand %p4748_p11, %p4745_p10 }
  0x3b   :  { %4753 = shalt.err (!%p4750_p12)
}
  0x3c   :  { %s4754_s18 = scalar_lea.vmem %s4966_s14, 512  ;;  %p4759_p0 = scmp.lt.s32.totalorder %s4966_s14, %s4966_s14 }
  0x3d   :  { %p4755_p13 = scmp.ne.s32.totalorder %s4966_s14, %s4754_s18  ;;  %p4760_p1 = scmp.lt.s32.totalorder %s4754_s18, %s4754_s18 }
  0x3f   :  { %p4761_p2 = por %p4760_p1, %p4759_p0 }
  0x41   :  { %p4762_p3 = pnand %p4761_p2, %p4755_p13 }
  0x43   :  { %4765 = shalt.err (!%p4762_p3)
}
  0x44   :  { %57 = dma.hbm_to_vmem [thread:$0]  %s5520_s2, 512, %s4966_s14, [#allocation6], %s4844_s15, %s4844_s15, %s4845_s16  }
  0x45   :  { %s4848_s19 = smov [#allocation10]   ;;  %s4849_s21 = smov [#allocation11]  }
  0x46   :  { %s79_s20 = sshll.u32 %s4848_s19, 4  ;;  %s93_s23 = sshll.u32 %s4849_s21, 4  ;;  %s80_s20 = int_to_ptr.vmem [resolvable:$true] %s79_s20  ;;  %s5003_s23 = int_to_ptr.vmem [resolvable:$true] %s93_s23 }
  0x47   :  { %s4766_s24 = scalar_lea.hbm %s5524_s6, 512 }
  0x48   :  { %p4767_p4 = scmp.ne.s32.totalorder %s5524_s6, %s4766_s24  ;;  %p4770_p5 = scmp.lt.u32.totalorder %s4766_s24, %s5524_s6 }
  0x4a   :  { %p4772_p6 = pnand %p4770_p5, %p4767_p4 }
  0x4c   :  { %4775 = shalt.err (!%p4772_p6)
}
  0x4d   :  { %s4776_s2 = scalar_lea.vmem %s80_s20, 512  ;;  %p4781_p8 = scmp.lt.s32.totalorder %s80_s20, %s80_s20 }
  0x4e   :  { %p4777_p7 = scmp.ne.s32.totalorder %s80_s20, %s4776_s2  ;;  %p4782_p9 = scmp.lt.s32.totalorder %s4776_s2, %s4776_s2 }
  0x50   :  { %p4783_p10 = por %p4782_p9, %p4781_p8 }
  0x52   :  { %p4784_p11 = pnand %p4783_p10, %p4777_p7 }
  0x54   :  { %4787 = shalt.err (!%p4784_p11)
}
  0x55   :  { %85 = dma.hbm_to_vmem [thread:$0]  %s5524_s6, 512, %s80_s20, [#allocation9], %s4844_s15, %s4844_s15, %s4845_s16  }
  0x56   :  { %s4788_s17 = scalar_lea.hbm %s5526_s8, 512 }
  0x57   :  { %p4789_p12 = scmp.ne.s32.totalorder %s5526_s8, %s4788_s17  ;;  %p4792_p13 = scmp.lt.u32.totalorder %s4788_s17, %s5526_s8 }
  0x59   :  { %p4794_p0 = pnand %p4792_p13, %p4789_p12 }
  0x5b   :  { %4797 = shalt.err (!%p4794_p0)
}
  0x5c   :  { %s4798_s21 = scalar_lea.vmem %s5003_s23, 512  ;;  %p4803_p2 = scmp.lt.s32.totalorder %s5003_s23, %s5003_s23 }
  0x5d   :  { %p4799_p1 = scmp.ne.s32.totalorder %s5003_s23, %s4798_s21  ;;  %p4804_p3 = scmp.lt.s32.totalorder %s4798_s21, %s4798_s21 }
  0x5f   :  { %p4805_p4 = por %p4804_p3, %p4803_p2 }
  0x61   :  { %p4806_p5 = pnand %p4805_p4, %p4799_p1 }
  0x63   :  { %4809 = shalt.err (!%p4806_p5)
}
  0x64   :  { %99 = dma.hbm_to_vmem [thread:$0]  %s5526_s8, 512, %s5003_s23, [#allocation12], %s4844_s15, %s4844_s15, %s4845_s16  }
  0x65   :  { %4832 = dma.done.wait [#allocation3], 256  }
  0x66   :  { %4833 = vsyncadd [#allocation3], 4294967040 }
  0x67   :  { %4834 = dma.done.wait [#allocation6], 768  }
  0x68   :  { %4835 = vsyncadd [#allocation6], 4294966528 }
  0x69   :  { %4836 = dma.done.wait [#allocation9], 1024  }
  0x6a   :  { %4837 = vsyncadd [#allocation9], 4294966272 }
  0x6b   :  { %4838 = dma.done.wait [#allocation12], 512  }
  0x6c   :  { %4839 = vsyncadd [#allocation12], 4294966784  ;;  %vm192_vm0 = vcmask 261120   ;;  %v5040_v0 = vld [vmem:[#allocation7] sm:$0xff]  ;;  %v5042_v1 = vld [vmem:[#allocation7 + $0x8] sm:$0xff]  ;;  %v4850_v8 = vmov 0.0   ;;  %v186_v16 = vlaneseq }
  0x6d   :  { %v5044_v2 = vld [vmem:[#allocation7 + $0x10] sm:$0xff]  ;;  %v5048_v3 = vpack.c.bf16 %v5042_v1, %v5040_v0  ;;  %v5050_v4 = vld [vmem:[#allocation7 + $0x18] sm:$0xff]  ;;  %v5052_v5 = vld [vmem:[#allocation2] sm:$0xff]  ;;  %4274 = vmatprep.subr.mxu1 %v4850_v8  ;;  %vm4851_vm1 = vmmov 0   ;;  %s4852_s25 = smov 96   ;;  %vm277_vm2 = vcmask 64512  }
  0x6e   :  { %v5056_v6 = vpack.c.bf16 %v5050_v4, %v5044_v2  ;;  %4271 = vmatprep.mubr.msk.f32.mxu0 %vm192_vm0, %v5052_v5  ;;  %v5064_v7 = vld [vmem:[#allocation2 + $0x8] sm:$0xff]  ;;  %4276 = vmatprep.mubr.msk.f32.mxu1 %vm4851_vm1, %v4850_v8  ;;  %v5077_v9 = vld [vmem:[%s5521_s3] ss:$0 sm:$0xff]  ;;  %v187_v17 = vshrl.u32 %v186_v16, 7  ;;  %v189_v18 = vand.u32 127, %v186_v16  ;;  %s4853_s3 = smov 64  }
  0x6f   :  { %4519 = vmatprep.subr.bf16.mxu0 %v5048_v3  ;;  %s4854_s4 = smov 88   ;;  %s4855_s24 = smov 120  }
  0x70   :  { %4521 = vmatpush3.bf16.msra.mxu0 %v5048_v3  ;;  %vm190_vm3 = vcmp.gt.s32.totalorder %v189_v18, %v187_v17  ;;  %s4856_s26 = smov 56   ;;  %s4857_s27 = smov 112  }
  0x71   :  { %4523 = vmatprep.subr.bf16.mxu0 %v5056_v6  ;;  %v5102_v20 = vsel %vm190_vm3, -1e+30, %v4850_v8  ;;  %s4858_s28 = smov 80   ;;  %s4859_s1 = smov 48  }
  0x72   :  { %s4860_s2 = smov 72   ;;  %s4861_s14 = smov 104  }
  0x73   :  { %s4862_s22 = smov 40  }
  0x74   :  { %4525 = vmatpush3.bf16.msra.mxu0 %v5056_v6 }
  0x75   :  { %4294 = vmatprep.subr.mxu0 %v4850_v8 }
  0x77   :  { %4272 = vmatmul.mubr.msk.f32.vlgmr.msra.gmra.mrb[0].mxu0 %vm192_vm0, %v5064_v7 }
  0x78   :  { %4296 = vmatprep.mubr.msk.f32.mxu0 %vm4851_vm1, %v4850_v8 }
 0x14a   :  { %v4273_v10 = vpop.f32.mrb[0].mxu0 }
 0x14b   :  { %v265_v11 = vpop.f32.mrb[1].mxu0  ;;  %v5085_v13 = vadd.f32 %v4273_v10, %v5077_v9 }
 0x14c   :  { %v5080_v12 = vadd.f32 %v5077_v9, %v265_v11 }
 0x14e   :  { %275 = vrot.lane.b32.xlu0 %v5080_v12, %s4852_s25 }
 0x152   :  { %353 = vrot.lane.b32.xlu0 %v5085_v13, %s4852_s25 }
 0x1c0   :  { %v276_v14 = vpop.permute.xlu0 %275 }
 0x1c1   :  { %4275 = vmatpush3.xpose.msk.msra.mxu1 %vm277_vm2, %v276_v14 }
 0x1c2   :  { %4279 = vmatprep.subr.mxu1 %v4850_v8 }
 0x1c4   :  { %4277 = vmatmul.mubr.msk.f32.vlgmr.msra.gmra.mrb[0].mxu1 %vm277_vm2, %v5080_v12  ;;  %v354_v15 = vpop.permute.xlu0 %353 }
 0x1c5   :  { %4280 = vmatpush3.xpose.msk.msra.mxu1 %vm277_vm2, %v354_v15  ;;  %4281 = vmatprep.mubr.msk.f32.mxu1 %vm4851_vm1, %v4850_v8 }
 0x1c6   :  { %4284 = vmatprep.subr.mxu1 %v4850_v8 }
 0x1c8   :  { %4282 = vmatmul.mubr.msk.f32.vlgmr.msra.gmra.mrb[2].mxu1 %vm277_vm2, %v5085_v13 }
 0x1c9   :  { %4286 = vmatprep.mubr.msk.f32.mxu1 %vm4851_vm1, %v4850_v8 }
 0x297   :  { %v348_v19 = vpop.f32.mrb[0].mxu1 }
 0x298   :  { %v429_v21 = vmul.f32 0.35355338, %v348_v19  ;;  %v4278_v22 = vpop.f32.mrb[1].mxu1 }
 0x29a   :  { %v431_v23 = vadd.f32 %v429_v21, %v5102_v20 }
 0x29b   :  { %v425_v24 = vpop.f32.mrb[2].mxu1 }
 0x29c   :  { %v430_v25 = vmul.f32 0.35355338, %v425_v24  ;;  %v4283_v26 = vpop.f32.mrb[3].mxu1  ;;  %v433_v27 = vsel %vm277_vm2, %v431_v23, -inf }
 0x29d   :  { %434 = vmax.xlane.f32.xlu1 %v433_v27 }
 0x29e   :  { %v432_v28 = vadd.f32 %v430_v25, %v5102_v20 }
 0x2a0   :  { %v436_v29 = vsel %vm277_vm2, %v432_v28, -inf }
 0x2a1   :  { %437 = vmax.xlane.f32.xlu1 %v436_v29 }
 0x2b2   :  { %455 = vrot.lane.b32.xlu1 %v5080_v12, %s4853_s3 }
 0x2b6   :  { %531 = vrot.lane.b32.xlu1 %v5085_v13, %s4853_s3 }
 0x2ba   :  { %687 = vrot.lane.b32.xlu1 %v5085_v13, %s4854_s4 }
 0x32a   :  { %v435_v30 = vpop.xlane.xlu1 %434 }
 0x32b   :  { %v439_v31 = vsub.f32 %v431_v23, %v435_v30 }
 0x32d   :  { %v441_v32 = vmul.f32 1.442695, %v439_v31 }
 0x32e   :  { %v438_v33 = vpop.xlane.xlu1 %437 }
 0x32f   :  { %4602 = vpow2.f32 %v441_v32  ;;  %v440_v34 = vsub.f32 %v432_v28, %v438_v33 }
 0x331   :  { %v443_v35 = vmul.f32 1.442695, %v440_v34 }
 0x332   :  { %v456_v36 = vpop.permute.xlu1 %455 }
 0x333   :  { %4604 = vpow2.f32 %v443_v35  ;;  %4285 = vmatpush3.msra.mxu1 %v456_v36 }
 0x334   :  { %4289 = vmatprep.subr.mxu1 %v4850_v8 }
 0x336   :  { %v532_v41 = vpop.permute.xlu1 %531 }
 0x339   :  { %v4603_v37 = vpop.eup %4602 }
 0x33a   :  { %v445_v38 = vsel %vm277_vm2, %v4603_v37, 0.0  ;;  %v688_v42 = vpop.permute.xlu1 %687 }
 0x33b   :  { %446 = vadd.xlane.f32.xlu0 %v445_v38  ;;  %v5184_v38 = vld [vmem:[#allocation8 + $0x8] sm:$0xff] }
 0x33d   :  { %v4605_v39 = vpop.eup %4604 }
 0x33e   :  { %v448_v40 = vsel %vm277_vm2, %v4605_v39, 0.0 }
 0x33f   :  { %449 = vadd.xlane.f32.xlu1 %v448_v40 }
 0x350   :  { %685 = vrot.lane.b32.xlu1 %v5085_v13, %s4855_s24 }
 0x351   :  { %609 = vrot.lane.b32.xlu0 %v5080_v12, %s4854_s4 }
 0x354   :  { %607 = vrot.lane.b32.xlu1 %v5080_v12, %s4855_s24 }
 0x3c8   :  { %v447_v43 = vpop.xlane.xlu0 %446 }
 0x3c9   :  { %4606 = vrcp.f32 %v447_v43 }
 0x3cc   :  { %v450_v44 = vpop.xlane.xlu1 %449  ;;  %v610_v45 = vpop.permute.xlu0 %609 }
 0x3cd   :  { %4608 = vrcp.f32 %v450_v44  ;;  %4295 = vmatpush3.xpose.msk.msra.mxu0 %vm277_vm2, %v610_v45 }
 0x3ce   :  { %4304 = vmatprep.subr.mxu0 %v4850_v8 }
 0x3d0   :  { %v686_v46 = vpop.permute.xlu1 %685 }
 0x3d3   :  { %v4607_v47 = vpop.eup %4606 }
 0x3d4   :  { %v453_v48 = vmul.f32 %v4607_v47, %v4603_v37  ;;  %v608_v49 = vpop.permute.xlu1 %607 }
 0x3d5   :  { %4297 = vmatmul.mubr.msk.f32.vlgmr.msra.gmra.mrb[2].mxu0 %vm277_vm2, %v608_v49 }
 0x3d6   :  { %4287 = vmatmul.mubr.msk.f32.vlgmr.msra.gmra.mrb[4].mxu1 %vm277_vm2, %v453_v48  ;;  %4306 = vmatprep.mubr.msk.f32.mxu0 %vm4851_vm1, %v4850_v8 }
 0x3d7   :  { %v4609_v50 = vpop.eup %4608  ;;  %4290 = vmatpush3.msra.mxu1 %v532_v41  ;;  %4291 = vmatprep.mubr.msk.f32.mxu1 %vm4851_vm1, %v4850_v8 }
 0x3d8   :  { %v454_v51 = vmul.f32 %v4609_v50, %v4605_v39  ;;  %4299 = vmatprep.subr.mxu1 %v4850_v8  ;;  %v5188_v39 = vld [vmem:[#allocation8] sm:$0xff] }
 0x3da   :  { %4292 = vmatmul.mubr.msk.f32.vlgmr.msra.gmra.mrb[6].mxu1 %vm277_vm2, %v454_v51 }
 0x3db   :  { %4301 = vmatprep.mubr.msk.f32.mxu1 %vm4851_vm1, %v4850_v8 }
 0x3de   :  { %4300 = vmatpush3.xpose.msk.msra.mxu1 %vm277_vm2, %v688_v42 }
 0x3df   :  { %4309 = vmatprep.subr.mxu1 %v4850_v8 }
 0x3e1   :  { %4302 = vmatmul.mubr.msk.f32.vlgmr.msra.gmra.mrb[8].mxu1 %vm277_vm2, %v686_v46 }
 0x3e2   :  { %4311 = vmatprep.mubr.msk.f32.mxu1 %vm4851_vm1, %v4850_v8 }
 0x4a8   :  { %v681_v52 = vpop.f32.mrb[2].mxu0 }
 0x4a9   :  { %v5138_v53 = vpop.f32.mrb[4].mxu1  ;;  %v4298_v54 = vpop.f32.mrb[3].mxu0  ;;  %v763_v63 = vmul.f32 0.35355338, %v681_v52 }
 0x4aa   :  { %v4288_v55 = vpop.f32.mrb[5].mxu1 }
 0x4ab   :  { %v765_v10 = vadd.f32 %v763_v63, %v5102_v20 }
 0x4ad   :  { %v5140_v56 = vpop.f32.mrb[6].mxu1  ;;  %v767_v11 = vsel %vm277_vm2, %v765_v10, -inf }
 0x4ae   :  { %v4293_v57 = vpop.f32.mrb[7].mxu1 }
 0x4b4   :  { %v759_v58 = vpop.f32.mrb[8].mxu1 }
 0x4b5   :  { %v764_v59 = vmul.f32 0.35355338, %v759_v58  ;;  %v4303_v60 = vpop.f32.mrb[9].mxu1 }
 0x4b7   :  { %v766_v61 = vadd.f32 %v764_v59, %v5102_v20 }
 0x4b9   :  { %v770_v62 = vsel %vm277_vm2, %v766_v61, -inf }
 0x4ba   :  { %771 = vmax.xlane.f32.xlu1 %v770_v62 }
 0x4cb   :  { %865 = vrot.lane.b32.xlu1 %v5085_v13, %s4856_s26 }
 0x4cf   :  { %1103 = vrot.lane.b32.xlu1 %v5080_v12, %s4857_s27 }
 0x4d3   :  { %1183 = vrot.lane.b32.xlu1 %v5085_v13, %s4858_s28 }
 0x4d7   :  { %1181 = vrot.lane.b32.xlu1 %v5085_v13, %s4857_s27 }
 0x4fb   :  { %768 = vmax.xlane.f32.xlu1 %v767_v11 }
 0x547   :  { %v772_v14 = vpop.xlane.xlu1 %771 }
 0x548   :  { %v774_v15 = vsub.f32 %v766_v61, %v772_v14  ;;  %v5211_v14 = vld [vmem:[#allocation8 + $0x10] sm:$0xff] }
 0x54a   :  { %v777_v16 = vmul.f32 1.442695, %v774_v15 }
 0x54b   :  { %v866_v17 = vpop.permute.xlu1 %865 }
 0x54c   :  { %4610 = vpow2.f32 %v777_v16  ;;  %4310 = vmatpush3.msra.mxu1 %v866_v17 }
 0x54d   :  { %4324 = vmatprep.subr.mxu1 %v4850_v8 }
 0x54f   :  { %v1104_v21 = vpop.permute.xlu1 %1103 }
 0x553   :  { %v1184_v22 = vpop.permute.xlu1 %1183 }
 0x556   :  { %v4611_v18 = vpop.eup %4610 }
 0x557   :  { %v782_v19 = vsel %vm277_vm2, %v4611_v18, 0.0  ;;  %v1182_v23 = vpop.permute.xlu1 %1181 }
 0x558   :  { %783 = vadd.xlane.f32.xlu0 %v782_v19 }
 0x56e   :  { %1105 = vrot.lane.b32.xlu0 %v5080_v12, %s4858_s28 }
 0x588   :  { %v769_v24 = vpop.xlane.xlu1 %768 }
 0x589   :  { %v773_v25 = vsub.f32 %v765_v10, %v769_v24 }
 0x58b   :  { %v775_v26 = vmul.f32 1.442695, %v773_v25 }
 0x58d   :  { %4612 = vpow2.f32 %v775_v26 }
 0x597   :  { %v4613_v27 = vpop.eup %4612 }
 0x598   :  { %v779_v28 = vsel %vm277_vm2, %v4613_v27, 0.0 }
 0x599   :  { %780 = vadd.xlane.f32.xlu0 %v779_v28 }
 0x5af   :  { %789 = vrot.lane.b32.xlu0 %v5080_v12, %s4856_s26 }
 0x5b3   :  { %1361 = vrot.lane.b32.xlu0 %v5085_v13, %s4859_s1 }
 0x5b7   :  { %1522 = vrot.lane.b32.xlu0 %v5080_v12, %s4860_s2 }
 0x5bb   :  { %1600 = vrot.lane.b32.xlu0 %v5085_v13, %s4860_s2 }
 0x5bf   :  { %1520 = vrot.lane.b32.xlu0 %v5080_v12, %s4861_s14 }
 0x5e5   :  { %v784_v29 = vpop.xlane.xlu0 %783 }
 0x5e6   :  { %4614 = vrcp.f32 %v784_v29 }
 0x5e9   :  { %v1106_v32 = vpop.permute.xlu0 %1105 }
 0x5f0   :  { %v4615_v30 = vpop.eup %4614 }
 0x5f1   :  { %v788_v31 = vmul.f32 %v4615_v30, %v4611_v18 }
 0x5f3   :  { %4312 = vmatmul.mubr.msk.f32.vlgmr.msra.gmra.mrb[10].mxu1 %vm277_vm2, %v788_v31 }
 0x5f4   :  { %4325 = vmatpush3.xpose.msk.msra.mxu1 %vm277_vm2, %v1106_v32  ;;  %4326 = vmatprep.mubr.msk.f32.mxu1 %vm4851_vm1, %v4850_v8 }
 0x5f5   :  { %4329 = vmatprep.subr.mxu1 %v4850_v8 }
 0x5f7   :  { %4327 = vmatmul.mubr.msk.f32.vlgmr.msra.gmra.mrb[12].mxu1 %vm277_vm2, %v1104_v21 }
 0x5f8   :  { %4330 = vmatpush3.xpose.msk.msra.mxu1 %vm277_vm2, %v1184_v22  ;;  %4331 = vmatprep.mubr.msk.f32.mxu1 %vm4851_vm1, %v4850_v8 }
 0x5f9   :  { %4339 = vmatprep.subr.mxu1 %v4850_v8 }
 0x5fb   :  { %4332 = vmatmul.mubr.msk.f32.vlgmr.msra.gmra.mrb[14].mxu1 %vm277_vm2, %v1182_v23 }
 0x5fc   :  { %4341 = vmatprep.mubr.msk.f32.mxu1 %vm4851_vm1, %v4850_v8 }
 0x626   :  { %v781_v33 = vpop.xlane.xlu0 %780 }
 0x627   :  { %4616 = vrcp.f32 %v781_v33 }
 0x62a   :  { %v790_v34 = vpop.permute.xlu0 %789 }
 0x62b   :  { %4305 = vmatpush3.msra.mxu0 %v790_v34 }
 0x62c   :  { %4314 = vmatprep.subr.mxu0 %v5184_v38 }
 0x62e   :  { %v1362_v35 = vpop.permute.xlu0 %1361 }
 0x62f   :  { %4340 = vmatpush3.msra.mxu1 %v1362_v35 }
 0x630   :  { %4349 = vmatprep.subr.mxu1 %v4850_v8 }
 0x631   :  { %v4617_v36 = vpop.eup %4616 }
 0x632   :  { %v787_v37 = vmul.f32 %v4617_v36, %v4613_v27  ;;  %v1523_v16 = vpop.permute.xlu0 %1522 }
 0x634   :  { %4307 = vmatmul.mubr.msk.f32.vlgmr.msra.gmra.mrb[4].mxu0 %vm277_vm2, %v787_v37 }
 0x635   :  { %4315 = vmatpush3.msra.mxu0 %v5184_v38 }
 0x636   :  { %4319 = vmatprep.subr.mxu0 %v5188_v39  ;;  %v1601_v21 = vpop.permute.xlu0 %1600 }
 0x63a   :  { %v1521_v23 = vpop.permute.xlu0 %1520 }
 0x6c6   :  { %v937_v40 = vpop.f32.mrb[10].mxu1 }
 0x6c7   :  { %v4313_v41 = vpop.f32.mrb[11].mxu1 }
 0x6ca   :  { %v1177_v42 = vpop.f32.mrb[12].mxu1 }
 0x6cb   :  { %v1259_v43 = vmul.f32 0.35355338, %v1177_v42  ;;  %v4328_v44 = vpop.f32.mrb[13].mxu1 }
 0x6cd   :  { %v1261_v45 = vadd.f32 %v1259_v43, %v5102_v20 }
 0x6ce   :  { %v1255_v46 = vpop.f32.mrb[14].mxu1 }
 0x6cf   :  { %v1260_v47 = vmul.f32 0.35355338, %v1255_v46  ;;  %v4333_v48 = vpop.f32.mrb[15].mxu1  ;;  %v1263_v49 = vsel %vm277_vm2, %v1261_v45, -inf }
 0x6d0   :  { %1264 = vmax.xlane.f32.xlu1 %v1263_v49 }
 0x6d1   :  { %v1262_v50 = vadd.f32 %v1260_v47, %v5102_v20 }
 0x6d3   :  { %v1266_v51 = vsel %vm277_vm2, %v1262_v50, -inf }
 0x6d4   :  { %1267 = vmax.xlane.f32.xlu1 %v1266_v51 }
 0x707   :  { %v861_v52 = vpop.f32.mrb[4].mxu0 }
 0x708   :  { %v4308_v54 = vpop.f32.mrb[5].mxu0  ;;  %4316 = vmatprep.mubr.msk.f32.mxu0 %vm277_vm2, %v861_v52 }
 0x709   :  { %4317 = vmatmul.mubr.msk.f32.vlgmr.msra.gmra.mrb[6].mxu0 %vm277_vm2, %v937_v40 }
 0x70a   :  { %4321 = vmatprep.mubr.msk.f32.mxu0 %vm277_vm2, %v5138_v53  ;;  %4320 = vmatpush3.msra.mxu0 %v5188_v39 }
 0x70b   :  { %4334 = vmatprep.subr.mxu0 %v4850_v8 }
 0x711   :  { %4322 = vmatmul.mubr.msk.f32.vlgmr.msra.gmra.mrb[6].mxu0 %vm277_vm2, %v5140_v56 }
 0x712   :  { %4336 = vmatprep.mubr.msk.f32.mxu0 %vm4851_vm1, %v4850_v8 }
 0x75d   :  { %v1265_v55 = vpop.xlane.xlu1 %1264 }
 0x75e   :  { %v1269_v57 = vsub.f32 %v1261_v45, %v1265_v55 }
 0x760   :  { %v1271_v58 = vmul.f32 1.442695, %v1269_v57  ;;  %v5248_v57 = vld [vmem:[#allocation8 + $0x18] sm:$0xff] }
 0x761   :  { %v1268_v59 = vpop.xlane.xlu1 %1267 }
 0x762   :  { %4618 = vpow2.f32 %v1271_v58  ;;  %v1270_v60 = vsub.f32 %v1262_v50, %v1268_v59 }
 0x764   :  { %v1273_v61 = vmul.f32 1.442695, %v1270_v60 }
 0x766   :  { %4620 = vpow2.f32 %v1273_v61 }
 0x76c   :  { %v4619_v62 = vpop.eup %4618 }
 0x76d   :  { %v1275_v53 = vsel %vm277_vm2, %v4619_v62, 0.0 }
 0x76e   :  { %1276 = vadd.xlane.f32.xlu1 %v1275_v53 }
 0x770   :  { %v4621_v63 = vpop.eup %4620 }
 0x771   :  { %v1278_v10 = vsel %vm277_vm2, %v4621_v63, 0.0 }
 0x772   :  { %1279 = vadd.xlane.f32.xlu1 %v1278_v10 }
 0x783   :  { %1285 = vrot.lane.b32.xlu1 %v5080_v12, %s4859_s1 }
 0x787   :  { %1598 = vrot.lane.b32.xlu1 %v5085_v13, %s4861_s14 }
 0x7fb   :  { %v1277_v56 = vpop.xlane.xlu1 %1276 }
 0x7fc   :  { %4622 = vrcp.f32 %v1277_v56 }
 0x7ff   :  { %v1280_v11 = vpop.xlane.xlu1 %1279 }
 0x800   :  { %4624 = vrcp.f32 %v1280_v11 }
 0x803   :  { %v1286_v15 = vpop.permute.xlu1 %1285 }
 0x804   :  { %4335 = vmatpush3.msra.mxu0 %v1286_v15 }
 0x805   :  { %4344 = vmatprep.subr.mxu0 %v5211_v14 }
 0x806   :  { %v4623_v17 = vpop.eup %4622 }
 0x807   :  { %v1283_v18 = vmul.f32 %v4623_v17, %v4619_v62  ;;  %v1599_v28 = vpop.permute.xlu1 %1598  ;;  %v5258_v62 = vld [vmem:[%s5523_s5] ss:$0 sm:$0xff] }
 0x809   :  { %4337 = vmatmul.mubr.msk.f32.vlgmr.msra.gmra.mrb[8].mxu0 %vm277_vm2, %v1283_v18 }
 0x80a   :  { %v4625_v19 = vpop.eup %4624  ;;  %4345 = vmatpush3.msra.mxu0 %v5211_v14 }
 0x80b   :  { %v1284_v22 = vmul.f32 %v4625_v19, %v4621_v63  ;;  %4354 = vmatprep.subr.mxu0 %v4850_v8 }
 0x80d   :  { %4342 = vmatmul.mubr.msk.f32.vlgmr.msra.gmra.mrb[16].mxu1 %vm277_vm2, %v1284_v22 }
 0x80e   :  { %4350 = vmatpush3.xpose.msk.msra.mxu1 %vm277_vm2, %v1523_v16  ;;  %4351 = vmatprep.mubr.msk.f32.mxu1 %vm4851_vm1, %v4850_v8 }
 0x80f   :  { %4359 = vmatprep.subr.mxu1 %v4850_v8 }
 0x811   :  { %4352 = vmatmul.mubr.msk.f32.vlgmr.msra.gmra.mrb[18].mxu1 %vm277_vm2, %v1521_v23 }
 0x812   :  { %4361 = vmatprep.mubr.msk.f32.mxu1 %vm4851_vm1, %v4850_v8 }
 0x8dc   :  { %v1357_v24 = vpop.f32.mrb[8].mxu0 }
 0x8dd   :  { %v4338_v25 = vpop.f32.mrb[9].mxu0  ;;  %4346 = vmatprep.mubr.msk.f32.mxu0 %vm277_vm2, %v1357_v24 }
 0x8e0   :  { %v1433_v26 = vpop.f32.mrb[16].mxu1 }
 0x8e1   :  { %v4343_v27 = vpop.f32.mrb[17].mxu1  ;;  %4347 = vmatmul.mubr.msk.f32.vlgmr.msra.gmra.mrb[6].mxu0 %vm277_vm2, %v1433_v26 }
 0x8e2   :  { %4355 = vmatpush3.xpose.msk.msra.mxu0 %vm277_vm2, %v1601_v21  ;;  %4356 = vmatprep.mubr.msk.f32.mxu0 %vm4851_vm1, %v4850_v8 }
 0x8e3   :  { %4364 = vmatprep.subr.mxu0 %v4850_v8 }
 0x8e4   :  { %v1594_v29 = vpop.f32.mrb[18].mxu1 }
 0x8e5   :  { %v1676_v30 = vmul.f32 0.35355338, %v1594_v29  ;;  %v4353_v31 = vpop.f32.mrb[19].mxu1  ;;  %4357 = vmatmul.mubr.msk.f32.vlgmr.msra.gmra.mrb[10].mxu0 %vm277_vm2, %v1599_v28  ;;  %v4597_v28 = vpack.i.bf16 %v5050_v4, %v5044_v2  ;;  %v126_v29 = vld [vmem:[#allocation5] sm:$0xff] }
 0x8e6   :  { %4366 = vmatprep.mubr.msk.f32.mxu0 %vm4851_vm1, %v4850_v8 }
 0x8e7   :  { %v1678_v32 = vadd.f32 %v1676_v30, %v5102_v20 }
 0x8e9   :  { %v1680_v33 = vsel %vm277_vm2, %v1678_v32, -inf }
 0x8ea   :  { %1681 = vmax.xlane.f32.xlu0 %v1680_v33 }
 0x977   :  { %v1682_v34 = vpop.xlane.xlu0 %1681 }
 0x978   :  { %v1686_v35 = vsub.f32 %v1678_v32, %v1682_v34 }
 0x97a   :  { %v1688_v36 = vmul.f32 1.442695, %v1686_v35 }
 0x97c   :  { %4626 = vpow2.f32 %v1688_v36 }
 0x986   :  { %v4627_v37 = vpop.eup %4626 }
 0x987   :  { %v1692_v40 = vsel %vm277_vm2, %v4627_v37, 0.0 }
 0x988   :  { %1693 = vadd.xlane.f32.xlu0 %v1692_v40 }
 0x9b8   :  { %v1672_v41 = vpop.f32.mrb[10].mxu0 }
 0x9b9   :  { %v1677_v42 = vmul.f32 0.35355338, %v1672_v41  ;;  %v4358_v43 = vpop.f32.mrb[11].mxu0 }
 0x9ba   :  { %v127_v43 = vld [vmem:[#allocation5 + $0x8] sm:$0xff] }
 0x9bb   :  { %v1679_v44 = vadd.f32 %v1677_v42, %v5102_v20 }
 0x9bd   :  { %v1683_v45 = vsel %vm277_vm2, %v1679_v44, -inf }
 0x9be   :  { %1684 = vmax.xlane.f32.xlu1 %v1683_v45 }
 0x9cf   :  { %1702 = vrot.lane.b32.xlu1 %v5080_v12, %s4862_s22 }
 0xa15   :  { %v1694_v46 = vpop.xlane.xlu0 %1693 }
 0xa16   :  { %4628 = vrcp.f32 %v1694_v46 }
 0xa20   :  { %v4629_v48 = vpop.eup %4628 }
 0xa21   :  { %v1700_v51 = vmul.f32 %v4629_v48, %v4627_v37  ;;  %v5287_v48 = vld [vmem:[%s5529_s11] ss:$0 sm:$0xff] }
 0xa4b   :  { %v1685_v47 = vpop.xlane.xlu1 %1684 }
 0xa4c   :  { %v1687_v49 = vsub.f32 %v1679_v44, %v1685_v47  ;;  %v5280_v44 = vld [vmem:[%s5528_s10] ss:$0 sm:$0xff] }
 0xa4e   :  { %v1690_v50 = vmul.f32 1.442695, %v1687_v49 }
 0xa4f   :  { %v1703_v52 = vpop.permute.xlu1 %1702 }
 0xa50   :  { %4630 = vpow2.f32 %v1690_v50  ;;  %4360 = vmatpush3.msra.mxu1 %v1703_v52 }
 0xa51   :  { %4362 = vmatmul.mubr.msk.f32.vlgmr.msra.gmra.mrb[20].mxu1 %vm277_vm2, %v1700_v51  ;;  %4527 = vmatprep.subr.bf16.mxu1 %v5048_v3 }
 0xa52   :  { %4529 = vmatpush3.bf16.msra.mxu1 %v5048_v3 }
 0xa53   :  { %4531 = vmatprep.subr.bf16.mxu1 %v5056_v6 }
 0xa56   :  { %4533 = vmatpush3.bf16.msra.mxu1 %v5056_v6 }
 0xa57   :  { %4396 = vmatprep.subr.mxu1 %v4850_v8 }
 0xa5a   :  { %v4631_v12 = vpop.eup %4630 }
 0xa5b   :  { %v1695_v54 = vsel %vm277_vm2, %v4631_v12, 0.0 }
 0xa5c   :  { %1696 = vadd.xlane.f32.xlu0 %v1695_v54 }
 0xa72   :  { %1778 = vrot.lane.b32.xlu0 %v5085_v13, %s4862_s22 }
 0xae9   :  { %v1697_v55 = vpop.xlane.xlu0 %1696 }
 0xaea   :  { %4632 = vrcp.f32 %v1697_v55 }
 0xaed   :  { %v1779_v58 = vpop.permute.xlu0 %1778 }
 0xaee   :  { %4365 = vmatpush3.msra.mxu0 %v1779_v58 }
 0xaef   :  { %4369 = vmatprep.subr.mxu0 %v5248_v57 }
 0xaf4   :  { %v4633_v3 = vpop.eup %4632 }
 0xaf5   :  { %v1701_v59 = vmul.f32 %v4633_v3, %v4631_v12 }
 0xaf7   :  { %4367 = vmatmul.mubr.msk.f32.vlgmr.msra.gmra.mrb[12].mxu0 %vm277_vm2, %v1701_v59 }
 0xaf8   :  { %4370 = vmatpush3.msra.mxu0 %v5248_v57 }
 0xb24   :  { %v1774_v6 = vpop.f32.mrb[20].mxu1 }
 0xb25   :  { %v4363_v60 = vpop.f32.mrb[21].mxu1  ;;  %4371 = vmatprep.mubr.msk.f32.mxu0 %vm277_vm2, %v1774_v6 }
 0xbca   :  { %v1850_v61 = vpop.f32.mrb[12].mxu0 }
 0xbcb   :  { %v4368_v13 = vpop.f32.mrb[13].mxu0  ;;  %4372 = vmatmul.mubr.msk.f32.vlgmr.msra.gmra.mrb[6].mxu0 %vm277_vm2, %v1850_v61 }
 0xbcc   :  { %4393 = vmatprep.mubr.msk.f32.mxu0 %vm192_vm0, %v126_v29 }
 0xc9e   :  { %v4373_v53 = vpop.f32.mrb[6].mxu0 }
 0xc9f   :  { %v1938_v63 = vadd.f32 %v4373_v53, %v5258_v62  ;;  %v1926_v10 = vpop.f32.mrb[7].mxu0 }
 0xca0   :  { %v1937_v56 = vadd.f32 %v5258_v62, %v1926_v10 }
 0xca1   :  { %v1940_v11 = vadd.f32 %v1938_v63, %v5064_v7 }
 0xca2   :  { %v1939_v15 = vadd.f32 %v1937_v56, %v5052_v5  ;;  %v4592_v5 = vpack.i.bf16 %v5042_v1, %v5040_v0 }
 0xca3   :  { %v1944_v16 = vsel %vm192_vm0, %v1940_v11, 0.0 }
 0xca4   :  { %1945 = vadd.xlane.f32.xlu0 %v1944_v16  ;;  %v1941_v17 = vsel %vm192_vm0, %v1939_v15, 0.0 }
 0xca5   :  { %1942 = vadd.xlane.f32.xlu1 %v1941_v17 }
 0xd31   :  { %v1946_v18 = vpop.xlane.xlu0 %1945 }
 0xd32   :  { %v1949_v19 = vmul.f32 0.03125, %v1946_v18  ;;  %v1943_v21 = vpop.xlane.xlu1 %1942 }
 0xd33   :  { %v1948_v22 = vmul.f32 0.03125, %v1943_v21 }
 0xd34   :  { %v1951_v23 = vsub.f32 %v1940_v11, %v1949_v19 }
 0xd35   :  { %v1950_v24 = vsub.f32 %v1939_v15, %v1948_v22 }
 0xd36   :  { %v1953_v25 = vmul.f32 %v1951_v23, %v1951_v23 }
 0xd37   :  { %v1952_v26 = vmul.f32 %v1950_v24, %v1950_v24 }
 0xd38   :  { %v1957_v27 = vsel %vm192_vm0, %v1953_v25, 0.0 }
 0xd39   :  { %1958 = vadd.xlane.f32.xlu0 %v1957_v27  ;;  %v1954_v7 = vsel %vm192_vm0, %v1952_v26, 0.0 }
 0xd3a   :  { %1955 = vadd.xlane.f32.xlu1 %v1954_v7 }
 0xd4b   :  { %4593 = vrot.lane.b32.xlu1 %v4592_v5, %s4852_s25 }
 0xd4f   :  { %4598 = vrot.lane.b32.xlu0 %v4597_v28, %s4852_s25  ;;  %2069 = vrot.lane.b32.xlu1 %v5077_v9, %s4852_s25 }
 0xdc6   :  { %v1959_v30 = vpop.xlane.xlu0 %1958 }
 0xdc7   :  { %v1961_v31 = vmul.f32 0.03125, %v1959_v30  ;;  %v1956_v32 = vpop.xlane.xlu1 %1955 }
 0xdc8   :  { %v1960_v33 = vmul.f32 0.03125, %v1956_v32 }
 0xdc9   :  { %v1963_v34 = vadd.f32 1e-05, %v1961_v31 }
 0xdca   :  { %v1962_v35 = vadd.f32 1e-05, %v1960_v33  ;;  %v4599_v0 = vpop.permute.xlu0 %4598 }
 0xdcb   :  { %4634 = vrsqrt.f32 %v1963_v34  ;;  %v4594_v1 = vpop.permute.xlu1 %4593  ;;  %v4601_v36 = vunpack.i.h.bf16 %v4599_v0  ;;  %v4600_v37 = vunpack.i.l.bf16 %v4599_v0 }
 0xdcc   :  { %4636 = vrsqrt.f32 %v1962_v35  ;;  %v4596_v2 = vunpack.i.h.bf16 %v4594_v1  ;;  %v4595_v4 = vunpack.i.l.bf16 %v4594_v1 }
 0xdcd   :  { %v4538_v41 = vpack.c.bf16 %v4601_v36, %v4600_v37 }
 0xdce   :  { %v4534_v40 = vpack.c.bf16 %v4596_v2, %v4595_v4 }
 0xdcf   :  { %v2070_v12 = vpop.permute.xlu1 %2069 }
 0xdd0   :  { %4535 = vmatprep.subr.bf16.mxu0 %v4534_v40 }
 0xdd1   :  { %4537 = vmatpush3.bf16.msra.mxu0 %v4534_v40 }
 0xdd2   :  { %4539 = vmatprep.subr.bf16.mxu0 %v4538_v41 }
 0xdd5   :  { %v4635_v42 = vpop.eup %4634  ;;  %4541 = vmatpush3.bf16.msra.mxu0 %v4538_v41 }
 0xdd6   :  { %v4637_v45 = vpop.eup %4636  ;;  %v1967_v46 = vmul.f32 %v4635_v42, %v1951_v23  ;;  %4406 = vmatprep.subr.mxu0 %v4850_v8 }
 0xdd7   :  { %v1966_v47 = vmul.f32 %v4637_v45, %v1950_v24 }
 0xdd8   :  { %4394 = vmatmul.mubr.msk.f32.vlgmr.msra.gmra.mrb[14].mxu0 %vm192_vm0, %v127_v43  ;;  %v1969_v49 = vmul.f32 %v5280_v44, %v1967_v46 }
 0xdd9   :  { %v1968_v50 = vmul.f32 %v5280_v44, %v1966_v47  ;;  %4408 = vmatprep.mubr.msk.f32.mxu0 %vm4851_vm1, %v4850_v8 }
 0xdda   :  { %v5297_v52 = vadd.f32 %v5287_v48, %v1969_v49 }
 0xddb   :  { %v5294_v51 = vadd.f32 %v5287_v48, %v1968_v50 }
 0xddd   :  { %4382 = vmatprep.mubr.msk.f32.mxu1 %vm192_vm0, %v5294_v51 }
 0xdde   :  { %4383 = vmatmul.mubr.msk.f32.vlgmr.msra.gmra.mrb[22].mxu1 %vm192_vm0, %v5297_v52 }
 0xddf   :  { %4398 = vmatprep.mubr.msk.f32.mxu1 %vm4851_vm1, %v4850_v8 }
 0xeab   :  { %v4395_v54 = vpop.f32.mrb[14].mxu0 }
 0xeac   :  { %v2144_v55 = vpop.f32.mrb[15].mxu0  ;;  %v5313_v60 = vadd.f32 %v4395_v54, %v2070_v12 }
 0xead   :  { %v5305_v58 = vadd.f32 %v2144_v55, %v2070_v12 }
 0xeaf   :  { %4397 = vmatpush3.xpose.msk.msra.mxu1 %vm277_vm2, %v5305_v58 }
 0xeb0   :  { %4401 = vmatprep.subr.mxu1 %v4850_v8 }
 0xeb1   :  { %v4384_v3 = vpop.f32.mrb[22].mxu1 }
 0xeb2   :  { %v2044_v59 = vpop.f32.mrb[23].mxu1  ;;  %v5322_v61 = vadd.f32 %v4384_v3, %v5077_v9 }
 0xeb3   :  { %v5311_v6 = vadd.f32 %v5077_v9, %v2044_v59 }
 0xeb5   :  { %4399 = vmatmul.mubr.msk.f32.vlgmr.msra.gmra.mrb[24].mxu1 %vm277_vm2, %v5311_v6 }
 0xeb6   :  { %4402 = vmatpush3.xpose.msk.msra.mxu1 %vm277_vm2, %v5313_v60  ;;  %4403 = vmatprep.mubr.msk.f32.mxu1 %vm4851_vm1, %v4850_v8 }
 0xeb7   :  { %4411 = vmatprep.subr.mxu1 %v4850_v8 }
 0xeb9   :  { %4404 = vmatmul.mubr.msk.f32.vlgmr.msra.gmra.mrb[26].mxu1 %vm277_vm2, %v5322_v61 }
 0xeba   :  { %4413 = vmatprep.mubr.msk.f32.mxu1 %vm4851_vm1, %v4850_v8 }
 0xf88   :  { %v2225_v13 = vpop.f32.mrb[24].mxu1 }
 0xf89   :  { %v4400_v53 = vpop.f32.mrb[25].mxu1  ;;  %v2305_v21 = vmul.f32 0.35355338, %v2225_v13 }
 0xf8b   :  { %v2307_v22 = vadd.f32 %v2305_v21, %v5102_v20 }
 0xf8c   :  { %v2301_v63 = vpop.f32.mrb[26].mxu1 }
 0xf8d   :  { %v2306_v10 = vmul.f32 0.35355338, %v2301_v63  ;;  %v4405_v56 = vpop.f32.mrb[27].mxu1  ;;  %v2309_v23 = vsel %vm277_vm2, %v2307_v22, -inf }
 0xf8f   :  { %v2308_v11 = vadd.f32 %v2306_v10, %v5102_v20 }
 0xf91   :  { %v2312_v15 = vsel %vm277_vm2, %v2308_v11, -inf }
 0xf92   :  { %2313 = vmax.xlane.f32.xlu1 %v2312_v15 }
 0xfa3   :  { %2563 = vrot.lane.b32.xlu1 %v5313_v60, %s4855_s24 }
 0xfa7   :  { %2561 = vrot.lane.b32.xlu1 %v5322_v61, %s4855_s24 }
0x101f   :  { %v2314_v9 = vpop.xlane.xlu1 %2313 }
0x1020   :  { %v2316_v16 = vsub.f32 %v2308_v11, %v2314_v9 }
0x1022   :  { %v2319_v17 = vmul.f32 1.442695, %v2316_v16 }
0x1023   :  { %v2564_v27 = vpop.permute.xlu1 %2563 }
0x1024   :  { %4638 = vpow2.f32 %v2319_v17 }
0x1027   :  { %v2562_v5 = vpop.permute.xlu1 %2561 }
0x102e   :  { %v4639_v18 = vpop.eup %4638 }
0x102f   :  { %v2324_v19 = vsel %vm277_vm2, %v4639_v18, 0.0 }
0x1030   :  { %2325 = vadd.xlane.f32.xlu0 %v2324_v19 }
0x1046   :  { %2407 = vrot.lane.b32.xlu0 %v5313_v60, %s4852_s25 }
0x1065   :  { %2310 = vmax.xlane.f32.xlu0 %v2309_v23 }
0x107b   :  { %2331 = vrot.lane.b32.xlu0 %v5305_v58, %s4852_s25 }
0x107f   :  { %2483 = vrot.lane.b32.xlu0 %v5311_v6, %s4855_s24 }
0x10bd   :  { %v2326_v24 = vpop.xlane.xlu0 %2325 }
0x10be   :  { %4640 = vrcp.f32 %v2326_v24 }
0x10c1   :  { %v2408_v25 = vpop.permute.xlu0 %2407 }
0x10c2   :  { %4412 = vmatpush3.msra.mxu1 %v2408_v25 }
0x10c3   :  { %4421 = vmatprep.subr.mxu1 %v4850_v8 }
0x10c8   :  { %v4641_v26 = vpop.eup %4640 }
0x10c9   :  { %v2330_v7 = vmul.f32 %v4641_v26, %v4639_v18 }
0x10cb   :  { %4414 = vmatmul.mubr.msk.f32.vlgmr.msra.gmra.mrb[28].mxu1 %vm277_vm2, %v2330_v7 }
0x10cc   :  { %4422 = vmatpush3.xpose.msk.msra.mxu1 %vm277_vm2, %v2564_v27  ;;  %4423 = vmatprep.mubr.msk.f32.mxu1 %vm4851_vm1, %v4850_v8 }
0x10cd   :  { %4431 = vmatprep.subr.mxu1 %v4850_v8 }
0x10cf   :  { %4424 = vmatmul.mubr.msk.f32.vlgmr.msra.gmra.mrb[30].mxu1 %vm277_vm2, %v2562_v5 }
0x10d0   :  { %4433 = vmatprep.mubr.msk.f32.mxu1 %vm4851_vm1, %v4850_v8 }
0x10f2   :  { %v2311_v28 = vpop.xlane.xlu0 %2310 }
0x10f3   :  { %v2315_v29 = vsub.f32 %v2307_v22, %v2311_v28 }
0x10f5   :  { %v2317_v30 = vmul.f32 1.442695, %v2315_v29 }
0x10f6   :  { %v2332_v31 = vpop.permute.xlu0 %2331 }
0x10f7   :  { %4642 = vpow2.f32 %v2317_v30  ;;  %4407 = vmatpush3.msra.mxu0 %v2332_v31 }
0x10f8   :  { %4416 = vmatprep.subr.mxu0 %v4850_v8 }
0x10fa   :  { %v2484_v2 = vpop.permute.xlu0 %2483 }
0x1101   :  { %v4643_v32 = vpop.eup %4642 }
0x1102   :  { %v2321_v33 = vsel %vm277_vm2, %v4643_v32, 0.0 }
0x1103   :  { %2322 = vadd.xlane.f32.xlu1 %v2321_v33 }
0x1114   :  { %2485 = vrot.lane.b32.xlu1 %v5305_v58, %s4855_s24 }
0x1190   :  { %v2323_v34 = vpop.xlane.xlu1 %2322 }
0x1191   :  { %4644 = vrcp.f32 %v2323_v34 }
0x1194   :  { %v2486_v1 = vpop.permute.xlu1 %2485 }
0x119b   :  { %v4645_v35 = vpop.eup %4644 }
0x119c   :  { %v2329_v0 = vmul.f32 %v4645_v35, %v4643_v32 }
0x119e   :  { %4409 = vmatmul.mubr.msk.f32.vlgmr.msra.gmra.mrb[16].mxu0 %vm277_vm2, %v2329_v0  ;;  %v5358_v36 = vpop.f32.mrb[28].mxu1 }
0x119f   :  { %4417 = vmatpush3.xpose.msk.msra.mxu0 %vm277_vm2, %v2486_v1  ;;  %v4415_v37 = vpop.f32.mrb[29].mxu1  ;;  %4418 = vmatprep.mubr.msk.f32.mxu0 %vm4851_vm1, %v4850_v8 }
0x11a0   :  { %4426 = vmatprep.subr.mxu0 %v4850_v8 }
0x11a2   :  { %4419 = vmatmul.mubr.msk.f32.vlgmr.msra.gmra.mrb[18].mxu0 %vm277_vm2, %v2484_v2  ;;  %v2635_v4 = vpop.f32.mrb[30].mxu1 }
0x11a3   :  { %v2640_v40 = vmul.f32 0.35355338, %v2635_v4  ;;  %v4425_v41 = vpop.f32.mrb[31].mxu1  ;;  %4428 = vmatprep.mubr.msk.f32.mxu0 %vm4851_vm1, %v4850_v8 }
0x11a5   :  { %v2642_v42 = vadd.f32 %v2640_v40, %v5102_v20 }
0x11a7   :  { %v2646_v43 = vsel %vm277_vm2, %v2642_v42, -inf }
0x11a8   :  { %2647 = vmax.xlane.f32.xlu1 %v2646_v43 }
0x11b9   :  { %2981 = vrot.lane.b32.xlu1 %v5305_v58, %s4857_s27 }
0x11bd   :  { %2979 = vrot.lane.b32.xlu1 %v5311_v6, %s4857_s27 }
0x11c1   :  { %3057 = vrot.lane.b32.xlu1 %v5322_v61, %s4857_s27 }
0x1235   :  { %v2648_v45 = vpop.xlane.xlu1 %2647 }
0x1236   :  { %v2650_v46 = vsub.f32 %v2642_v42, %v2648_v45 }
0x1238   :  { %v2653_v47 = vmul.f32 1.442695, %v2650_v46 }
0x1239   :  { %v2982_v56 = vpop.permute.xlu1 %2981 }
0x123a   :  { %4646 = vpow2.f32 %v2653_v47 }
0x123d   :  { %v2980_v9 = vpop.permute.xlu1 %2979 }
0x1244   :  { %v4647_v49 = vpop.eup %4646 }
0x1245   :  { %v2658_v50 = vsel %vm277_vm2, %v4647_v49, 0.0 }
0x1246   :  { %2659 = vadd.xlane.f32.xlu0 %v2658_v50 }
0x125c   :  { %2741 = vrot.lane.b32.xlu0 %v5313_v60, %s4854_s4 }
0x1260   :  { %3059 = vrot.lane.b32.xlu0 %v5313_v60, %s4857_s27 }
0x1271   :  { %v5380_v12 = vpop.f32.mrb[16].mxu0 }
0x1272   :  { %v4410_v54 = vpop.f32.mrb[17].mxu0 }
0x1275   :  { %v2557_v55 = vpop.f32.mrb[18].mxu0 }
0x1276   :  { %v2639_v3 = vmul.f32 0.35355338, %v2557_v55  ;;  %v4420_v59 = vpop.f32.mrb[19].mxu0 }
0x1278   :  { %v2641_v13 = vadd.f32 %v2639_v3, %v5102_v20 }
0x127a   :  { %v2643_v53 = vsel %vm277_vm2, %v2641_v13, -inf }
0x127f   :  { %2644 = vmax.xlane.f32.xlu0 %v2643_v53 }
0x1295   :  { %2665 = vrot.lane.b32.xlu0 %v5305_v58, %s4854_s4 }
0x1299   :  { %3237 = vrot.lane.b32.xlu0 %v5313_v60, %s4858_s28 }
0x129d   :  { %3398 = vrot.lane.b32.xlu0 %v5305_v58, %s4861_s14 }
0x12a1   :  { %3476 = vrot.lane.b32.xlu0 %v5313_v60, %s4861_s14 }
0x12a5   :  { %3396 = vrot.lane.b32.xlu0 %v5311_v6, %s4861_s14 }
0x12a9   :  { %3474 = vrot.lane.b32.xlu0 %v5322_v61, %s4861_s14  ;;  %v3058_v61 = vpop.permute.xlu1 %3057 }
0x12d3   :  { %v2660_v63 = vpop.xlane.xlu0 %2659 }
0x12d4   :  { %4648 = vrcp.f32 %v2660_v63 }
0x12d7   :  { %v2742_v10 = vpop.permute.xlu0 %2741 }
0x12d8   :  { %4432 = vmatpush3.msra.mxu1 %v2742_v10 }
0x12d9   :  { %4446 = vmatprep.subr.mxu1 %v4850_v8 }
0x12db   :  { %v3060_v6 = vpop.permute.xlu0 %3059 }
0x12de   :  { %v4649_v11 = vpop.eup %4648 }
0x12df   :  { %v2664_v15 = vmul.f32 %v4649_v11, %v4647_v49 }
0x12e1   :  { %4434 = vmatmul.mubr.msk.f32.vlgmr.msra.gmra.mrb[32].mxu1 %vm277_vm2, %v2664_v15 }
0x12e2   :  { %4447 = vmatpush3.xpose.msk.msra.mxu1 %vm277_vm2, %v2982_v56  ;;  %4448 = vmatprep.mubr.msk.f32.mxu1 %vm4851_vm1, %v4850_v8 }
0x12e3   :  { %4451 = vmatprep.subr.mxu1 %v4850_v8 }
0x12e5   :  { %4449 = vmatmul.mubr.msk.f32.vlgmr.msra.gmra.mrb[34].mxu1 %vm277_vm2, %v2980_v9 }
0x12e6   :  { %4452 = vmatpush3.xpose.msk.msra.mxu1 %vm277_vm2, %v3060_v6  ;;  %4453 = vmatprep.mubr.msk.f32.mxu1 %vm4851_vm1, %v4850_v8 }
0x12e7   :  { %4461 = vmatprep.subr.mxu1 %v4850_v8 }
0x12e9   :  { %4454 = vmatmul.mubr.msk.f32.vlgmr.msra.gmra.mrb[36].mxu1 %vm277_vm2, %v3058_v61 }
0x12ea   :  { %4463 = vmatprep.mubr.msk.f32.mxu1 %vm4851_vm1, %v4850_v8 }
0x130c   :  { %v2645_v16 = vpop.xlane.xlu0 %2644 }
0x130d   :  { %v2649_v17 = vsub.f32 %v2641_v13, %v2645_v16 }
0x130f   :  { %v2651_v18 = vmul.f32 1.442695, %v2649_v17 }
0x1310   :  { %v2666_v19 = vpop.permute.xlu0 %2665 }
0x1311   :  { %4650 = vpow2.f32 %v2651_v18  ;;  %4427 = vmatpush3.msra.mxu0 %v2666_v19 }
0x1312   :  { %4436 = vmatprep.subr.mxu0 %v5184_v38 }
0x1314   :  { %v3238_v21 = vpop.permute.xlu0 %3237 }
0x1315   :  { %4462 = vmatpush3.msra.mxu1 %v3238_v21 }
0x1316   :  { %4471 = vmatprep.subr.mxu1 %v4850_v8 }
0x1318   :  { %v3399_v55 = vpop.permute.xlu0 %3398 }
0x131b   :  { %v4651_v22 = vpop.eup %4650 }
0x131c   :  { %v2655_v23 = vsel %vm277_vm2, %v4651_v22, 0.0  ;;  %v3477_v59 = vpop.permute.xlu0 %3476 }
0x131d   :  { %2656 = vadd.xlane.f32.xlu1 %v2655_v23 }
0x1320   :  { %v3397_v13 = vpop.permute.xlu0 %3396 }
0x1324   :  { %v3475_v56 = vpop.permute.xlu0 %3474 }
0x13aa   :  { %v2657_v24 = vpop.xlane.xlu1 %2656 }
0x13ab   :  { %4652 = vrcp.f32 %v2657_v24 }
0x13b4   :  { %v2813_v25 = vpop.f32.mrb[32].mxu1 }
0x13b5   :  { %v4653_v26 = vpop.eup %4652  ;;  %v4435_v27 = vpop.f32.mrb[33].mxu1 }
0x13b6   :  { %v2663_v7 = vmul.f32 %v4653_v26, %v4651_v22 }
0x13b8   :  { %4429 = vmatmul.mubr.msk.f32.vlgmr.msra.gmra.mrb[20].mxu0 %vm277_vm2, %v2663_v7  ;;  %v3053_v5 = vpop.f32.mrb[34].mxu1 }
0x13b9   :  { %v3135_v28 = vmul.f32 0.35355338, %v3053_v5  ;;  %v4450_v29 = vpop.f32.mrb[35].mxu1  ;;  %4437 = vmatpush3.msra.mxu0 %v5184_v38 }
0x13ba   :  { %4441 = vmatprep.subr.mxu0 %v5188_v39 }
0x13bb   :  { %v3137_v30 = vadd.f32 %v3135_v28, %v5102_v20 }
0x13bc   :  { %v3131_v31 = vpop.f32.mrb[36].mxu1 }
0x13bd   :  { %v3136_v32 = vmul.f32 0.35355338, %v3131_v31  ;;  %v4455_v33 = vpop.f32.mrb[37].mxu1  ;;  %v3139_v34 = vsel %vm277_vm2, %v3137_v30, -inf }
0x13be   :  { %3140 = vmax.xlane.f32.xlu1 %v3139_v34 }
0x13bf   :  { %v3138_v35 = vadd.f32 %v3136_v32, %v5102_v20 }
0x13c1   :  { %v3142_v0 = vsel %vm277_vm2, %v3138_v35, -inf }
0x13c2   :  { %3143 = vmax.xlane.f32.xlu1 %v3142_v0 }
0x144b   :  { %v3141_v1 = vpop.xlane.xlu1 %3140 }
0x144c   :  { %v3145_v37 = vsub.f32 %v3137_v30, %v3141_v1 }
0x144e   :  { %v3147_v2 = vmul.f32 1.442695, %v3145_v37 }
0x144f   :  { %v3144_v4 = vpop.xlane.xlu1 %3143 }
0x1450   :  { %4654 = vpow2.f32 %v3147_v2  ;;  %v3146_v38 = vsub.f32 %v3138_v35, %v3144_v4 }
0x1452   :  { %v3149_v40 = vmul.f32 1.442695, %v3146_v38 }
0x1454   :  { %4656 = vpow2.f32 %v3149_v40 }
0x145a   :  { %v4655_v41 = vpop.eup %4654 }
0x145b   :  { %v3151_v42 = vsel %vm277_vm2, %v4655_v41, 0.0 }
0x145c   :  { %3152 = vadd.xlane.f32.xlu1 %v3151_v42 }
0x145e   :  { %v4657_v43 = vpop.eup %4656 }
0x145f   :  { %v3154_v45 = vsel %vm277_vm2, %v4657_v43, 0.0 }
0x1460   :  { %3155 = vadd.xlane.f32.xlu1 %v3154_v45 }
0x1471   :  { %3161 = vrot.lane.b32.xlu1 %v5305_v58, %s4858_s28 }
0x148b   :  { %v2737_v46 = vpop.f32.mrb[20].mxu0 }
0x148c   :  { %v4430_v47 = vpop.f32.mrb[21].mxu0  ;;  %4438 = vmatprep.mubr.msk.f32.mxu0 %vm277_vm2, %v2737_v46 }
0x148d   :  { %4439 = vmatmul.mubr.msk.f32.vlgmr.msra.gmra.mrb[22].mxu0 %vm277_vm2, %v2813_v25 }
0x148e   :  { %4443 = vmatprep.mubr.msk.f32.mxu0 %vm277_vm2, %v5380_v12  ;;  %4442 = vmatpush3.msra.mxu0 %v5188_v39 }
0x148f   :  { %4456 = vmatprep.subr.mxu0 %v4850_v8 }
0x1495   :  { %4444 = vmatmul.mubr.msk.f32.vlgmr.msra.gmra.mrb[22].mxu0 %vm277_vm2, %v5358_v36 }
0x1496   :  { %4458 = vmatprep.mubr.msk.f32.mxu0 %vm4851_vm1, %v4850_v8 }
0x14e9   :  { %v3153_v49 = vpop.xlane.xlu1 %3152 }
0x14ea   :  { %4658 = vrcp.f32 %v3153_v49 }
0x14ed   :  { %v3156_v50 = vpop.xlane.xlu1 %3155 }
0x14ee   :  { %4660 = vrcp.f32 %v3156_v50 }
0x14f1   :  { %v3162_v54 = vpop.permute.xlu1 %3161 }
0x14f2   :  { %4457 = vmatpush3.msra.mxu0 %v3162_v54 }
0x14f3   :  { %4466 = vmatprep.subr.mxu0 %v5211_v14 }
0x14f4   :  { %v4659_v12 = vpop.eup %4658 }
0x14f5   :  { %v3159_v3 = vmul.f32 %v4659_v12, %v4655_v41  ;;  %v137_v12 = vld [vmem:[#allocation10 + $0x8] sm:$0xff] }
0x14f7   :  { %4459 = vmatmul.mubr.msk.f32.vlgmr.msra.gmra.mrb[24].mxu0 %vm277_vm2, %v3159_v3 }
0x14f8   :  { %v4661_v39 = vpop.eup %4660  ;;  %4467 = vmatpush3.msra.mxu0 %v5211_v14 }
0x14f9   :  { %v3160_v36 = vmul.f32 %v4661_v39, %v4657_v43  ;;  %4476 = vmatprep.subr.mxu0 %v4850_v8  ;;  %v138_v39 = vld [vmem:[#allocation10 + $0x10] sm:$0xff] }
0x14fb   :  { %4464 = vmatmul.mubr.msk.f32.vlgmr.msra.gmra.mrb[38].mxu1 %vm277_vm2, %v3160_v36 }
0x14fc   :  { %4472 = vmatpush3.xpose.msk.msra.mxu1 %vm277_vm2, %v3399_v55  ;;  %4473 = vmatprep.mubr.msk.f32.mxu1 %vm4851_vm1, %v4850_v8 }
0x14fd   :  { %4481 = vmatprep.subr.mxu1 %v4850_v8 }
0x14ff   :  { %4474 = vmatmul.mubr.msk.f32.vlgmr.msra.gmra.mrb[40].mxu1 %vm277_vm2, %v3397_v13  ;;  %v140_v13 = vld [vmem:[#allocation11] sm:$0xff] }
0x1500   :  { %4483 = vmatprep.mubr.msk.f32.mxu1 %vm4851_vm1, %v4850_v8 }
0x15ca   :  { %v3233_v53 = vpop.f32.mrb[24].mxu0 }
0x15cb   :  { %v4460_v14 = vpop.f32.mrb[25].mxu0  ;;  %4468 = vmatprep.mubr.msk.f32.mxu0 %vm277_vm2, %v3233_v53  ;;  %v141_v53 = vld [vmem:[#allocation11 + $0x8] sm:$0xff] }
0x15cc   :  { %v4550_v14 = vpack.c.bf16 %v141_v53, %v140_v13 }
0x15ce   :  { %v3309_v63 = vpop.f32.mrb[38].mxu1 }
0x15cf   :  { %v4465_v10 = vpop.f32.mrb[39].mxu1  ;;  %4469 = vmatmul.mubr.msk.f32.vlgmr.msra.gmra.mrb[22].mxu0 %vm277_vm2, %v3309_v63 }
0x15d0   :  { %4477 = vmatpush3.xpose.msk.msra.mxu0 %vm277_vm2, %v3477_v59  ;;  %4478 = vmatprep.mubr.msk.f32.mxu0 %vm4851_vm1, %v4850_v8  ;;  %v139_v59 = vld [vmem:[#allocation10 + $0x18] sm:$0xff] }
0x15d1   :  { %4486 = vmatprep.subr.mxu0 %v4850_v8  ;;  %v4546_v36 = vpack.c.bf16 %v139_v59, %v138_v39 }
0x15d2   :  { %v3470_v11 = vpop.f32.mrb[40].mxu1 }
0x15d3   :  { %v3552_v15 = vmul.f32 0.35355338, %v3470_v11  ;;  %v4475_v9 = vpop.f32.mrb[41].mxu1  ;;  %4479 = vmatmul.mubr.msk.f32.vlgmr.msra.gmra.mrb[26].mxu0 %vm277_vm2, %v3475_v56 }
0x15d4   :  { %4488 = vmatprep.mubr.msk.f32.mxu0 %vm4851_vm1, %v4850_v8 }
0x15d5   :  { %v3554_v6 = vadd.f32 %v3552_v15, %v5102_v20 }
0x15d7   :  { %v3556_v61 = vsel %vm277_vm2, %v3554_v6, -inf }
0x15d8   :  { %3557 = vmax.xlane.f32.xlu1 %v3556_v61 }
0x1665   :  { %v3558_v16 = vpop.xlane.xlu1 %3557 }
0x1666   :  { %v3562_v17 = vsub.f32 %v3554_v6, %v3558_v16 }
0x1668   :  { %v3564_v18 = vmul.f32 1.442695, %v3562_v17 }
0x166a   :  { %4662 = vpow2.f32 %v3564_v18 }
0x1674   :  { %v4663_v25 = vpop.eup %4662 }
0x1675   :  { %v3568_v8 = vsel %vm277_vm2, %v4663_v25, 0.0 }
0x16a6   :  { %v3548_v19 = vpop.f32.mrb[26].mxu0 }
0x16a7   :  { %v3553_v21 = vmul.f32 0.35355338, %v3548_v19  ;;  %v4480_v22 = vpop.f32.mrb[27].mxu0 }
0x16a9   :  { %v3555_v23 = vadd.f32 %v3553_v21, %v5102_v20 }
0x16ab   :  { %v3559_v24 = vsel %vm277_vm2, %v3555_v23, -inf }
0x16ac   :  { %3560 = vmax.xlane.f32.xlu0 %v3559_v24  ;;  %v143_v24 = vld [vmem:[#allocation11 + $0x18] sm:$0xff] }
0x16b0   :  { %3569 = vadd.xlane.f32.xlu0 %v3568_v8  ;;  %v4067_v8 = vld [vmem:[%s5525_s7] ss:$0 sm:$0xff]  ;;  %s4863_s7 = smov [#allocation13]  }
0x16c6   :  { %3578 = vrot.lane.b32.xlu0 %v5305_v58, %s4860_s2 }
0x1739   :  { %v3561_v26 = vpop.xlane.xlu0 %3560 }
0x173a   :  { %v3563_v27 = vsub.f32 %v3555_v23, %v3561_v26  ;;  %v142_v23 = vld [vmem:[#allocation11 + $0x10] sm:$0xff] }
0x173c   :  { %v3566_v7 = vmul.f32 1.442695, %v3563_v27 }
0x173d   :  { %v3570_v5 = vpop.xlane.xlu0 %3569 }
0x173e   :  { %4664 = vpow2.f32 %v3566_v7 }
0x173f   :  { %4666 = vrcp.f32 %v3570_v5 }
0x1741   :  { %v3579_v28 = vpop.permute.xlu0 %3578 }
0x1742   :  { %4482 = vmatpush3.msra.mxu1 %v3579_v28 }
0x1748   :  { %v4665_v29 = vpop.eup %4664 }
0x1749   :  { %v4667_v20 = vpop.eup %4666  ;;  %v3571_v30 = vsel %vm277_vm2, %v4665_v29, 0.0 }
0x174a   :  { %v3576_v31 = vmul.f32 %v4667_v20, %v4663_v25  ;;  %3572 = vadd.xlane.f32.xlu1 %v3571_v30  ;;  %v4554_v25 = vpack.c.bf16 %v143_v24, %v142_v23  ;;  %v4068_v20 = vld [vmem:[%s5527_s9] ss:$0 sm:$0xff]  ;;  %s4050_s9 = sshll.u32 %s4863_s7, 4  ;;  %s4051_s9 = int_to_ptr.vmem [resolvable:$true] %s4050_s9 }
0x174b   :  { %s4810_s21 = scalar_lea.vmem %s4051_s9, 256  ;;  %p4815_p7 = scmp.lt.s32.totalorder %s4051_s9, %s4051_s9 }
0x174c   :  { %4484 = vmatmul.mubr.msk.f32.vlgmr.msra.gmra.mrb[42].mxu1 %vm277_vm2, %v3576_v31  ;;  %p4811_p6 = scmp.ne.s32.totalorder %s4051_s9, %s4810_s21  ;;  %p4816_p8 = scmp.lt.s32.totalorder %s4810_s21, %s4810_s21 }
0x174e   :  { %p4817_p9 = por %p4816_p8, %p4815_p7 }
0x1750   :  { %p4818_p10 = pnand %p4817_p9, %p4811_p6 }
0x175b   :  { %3654 = vrot.lane.b32.xlu1 %v5313_v60, %s4860_s2 }
0x17d7   :  { %v3573_v58 = vpop.xlane.xlu1 %3572 }
0x17d8   :  { %4668 = vrcp.f32 %v3573_v58 }
0x17db   :  { %v3655_v32 = vpop.permute.xlu1 %3654 }
0x17dc   :  { %4487 = vmatpush3.msra.mxu0 %v3655_v32 }
0x17dd   :  { %4491 = vmatprep.subr.mxu0 %v5248_v57 }
0x17e2   :  { %v4669_v33 = vpop.eup %4668 }
0x17e3   :  { %v3577_v34 = vmul.f32 %v4669_v33, %v4665_v29 }
0x17e5   :  { %4489 = vmatmul.mubr.msk.f32.vlgmr.msra.gmra.mrb[28].mxu0 %vm277_vm2, %v3577_v34 }
0x17e6   :  { %4492 = vmatpush3.msra.mxu0 %v5248_v57 }
0x17e7   :  { %4551 = vmatprep.subr.bf16.mxu0 %v4550_v14 }
0x181f   :  { %v3650_v35 = vpop.f32.mrb[42].mxu1 }
0x1820   :  { %v4485_v0 = vpop.f32.mrb[43].mxu1  ;;  %4493 = vmatprep.mubr.msk.f32.mxu0 %vm277_vm2, %v3650_v35 }
0x18b8   :  { %v3726_v1 = vpop.f32.mrb[28].mxu0 }
0x18b9   :  { %v4490_v37 = vpop.f32.mrb[29].mxu0  ;;  %4494 = vmatmul.mubr.msk.f32.vlgmr.msra.gmra.mrb[22].mxu0 %vm277_vm2, %v3726_v1 }
0x18ba   :  { %4553 = vmatpush3.bf16.msra.mxu0 %v4550_v14 }
0x18bb   :  { %4555 = vmatprep.subr.bf16.mxu0 %v4554_v25 }
0x18be   :  { %4557 = vmatpush3.bf16.msra.mxu0 %v4554_v25 }
0x198c   :  { %v4495_v60 = vpop.f32.mrb[22].mxu0 }
0x198d   :  { %v3814_v2 = vadd.f32 %v4495_v60, %v5258_v62  ;;  %v3802_v4 = vpop.f32.mrb[23].mxu0 }
0x198e   :  { %v3813_v38 = vadd.f32 %v5258_v62, %v3802_v4 }
0x198f   :  { %v3816_v40 = vadd.f32 %v3814_v2, %v5297_v52 }
0x1990   :  { %v3815_v41 = vadd.f32 %v3813_v38, %v5294_v51  ;;  %v136_v51 = vld [vmem:[#allocation10] sm:$0xff] }
0x1991   :  { %v3820_v57 = vsel %vm192_vm0, %v3816_v40, 0.0  ;;  %v4542_v3 = vpack.c.bf16 %v137_v12, %v136_v51 }
0x1992   :  { %3821 = vadd.xlane.f32.xlu0 %v3820_v57  ;;  %v3817_v42 = vsel %vm192_vm0, %v3815_v41, 0.0 }
0x1993   :  { %3818 = vadd.xlane.f32.xlu1 %v3817_v42  ;;  %4543 = vmatprep.subr.bf16.mxu1 %v4542_v3 }
0x1994   :  { %4545 = vmatpush3.bf16.msra.mxu1 %v4542_v3 }
0x1995   :  { %4547 = vmatprep.subr.bf16.mxu1 %v4546_v36 }
0x1998   :  { %4549 = vmatpush3.bf16.msra.mxu1 %v4546_v36 }
0x1a1f   :  { %v3822_v43 = vpop.xlane.xlu0 %3821 }
0x1a20   :  { %v3824_v45 = vmul.f32 0.03125, %v3822_v43  ;;  %v3819_v46 = vpop.xlane.xlu1 %3818 }
0x1a21   :  { %v3823_v47 = vmul.f32 0.03125, %v3819_v46 }
0x1a22   :  { %v3826_v49 = vsub.f32 %v3816_v40, %v3824_v45 }
0x1a23   :  { %v3825_v50 = vsub.f32 %v3815_v41, %v3823_v47 }
0x1a24   :  { %v3828_v54 = vmul.f32 %v3826_v49, %v3826_v49 }
0x1a25   :  { %v3827_v55 = vmul.f32 %v3825_v50, %v3825_v50 }
0x1a26   :  { %v3832_v62 = vsel %vm192_vm0, %v3828_v54, 0.0 }
0x1a27   :  { %3833 = vadd.xlane.f32.xlu1 %v3832_v62  ;;  %v3829_v52 = vsel %vm192_vm0, %v3827_v55, 0.0 }
0x1a28   :  { %3830 = vadd.xlane.f32.xlu0 %v3829_v52 }
0x1ab4   :  { %v3834_v63 = vpop.xlane.xlu1 %3833 }
0x1ab5   :  { %v3836_v10 = vmul.f32 0.03125, %v3834_v63  ;;  %v3831_v56 = vpop.xlane.xlu0 %3830 }
0x1ab6   :  { %v3835_v11 = vmul.f32 0.03125, %v3831_v56 }
0x1ab7   :  { %v3838_v15 = vadd.f32 1e-05, %v3836_v10 }
0x1ab8   :  { %v3837_v9 = vadd.f32 1e-05, %v3835_v11 }
0x1ab9   :  { %4670 = vrsqrt.f32 %v3838_v15 }
0x1aba   :  { %4672 = vrsqrt.f32 %v3837_v9 }
0x1ac3   :  { %v4671_v6 = vpop.eup %4670 }
0x1ac4   :  { %v4673_v61 = vpop.eup %4672  ;;  %v3842_v16 = vmul.f32 %v4671_v6, %v3826_v49 }
0x1ac5   :  { %v3841_v17 = vmul.f32 %v4673_v61, %v3825_v50 }
0x1ac6   :  { %v3844_v18 = vmul.f32 %v5280_v44, %v3842_v16 }
0x1ac7   :  { %v3843_v19 = vmul.f32 %v5280_v44, %v3841_v17 }
0x1ac8   :  { %v3846_v22 = vadd.f32 %v5287_v48, %v3844_v18 }
0x1ac9   :  { %v3845_v21 = vadd.f32 %v5287_v48, %v3843_v19 }
0x1acb   :  { %4504 = vmatprep.mubr.msk.f32.mxu1 %vm192_vm0, %v3845_v21 }
0x1acc   :  { %4505 = vmatmul.mubr.msk.f32.vlgmr.msra.gmra.mrb[44].mxu1 %vm192_vm0, %v3846_v22 }
0x1b9f   :  { %v4506_v26 = vpop.f32.mrb[44].mxu1 }
0x1ba0   :  { %v3925_v27 = vadd.f32 %v4506_v26, %v4067_v8  ;;  %v3919_v7 = vpop.f32.mrb[45].mxu1 }
0x1ba1   :  { %v3920_v5 = vadd.f32 %v4067_v8, %v3919_v7 }
0x1ba2   :  { %v3929_v29 = vmax.f32 %v3925_v27, 0.0 }
0x1ba3   :  { %v3928_v28 = vmax.f32 %v3920_v5, 0.0 }
0x1ba5   :  { %4515 = vmatprep.mubr.msk.f32.mxu0 %vm192_vm0, %v3928_v28 }
0x1ba6   :  { %4516 = vmatmul.mubr.msk.f32.vlgmr.msra.gmra.mrb[30].mxu0 %vm192_vm0, %v3929_v29 }
0x1c79   :  { %v4517_v30 = vpop.f32.mrb[30].mxu0 }
0x1c7a   :  { %v4008_v31 = vadd.f32 %v4517_v30, %v4068_v20  ;;  %v4002_v58 = vpop.f32.mrb[31].mxu0 }
0x1c7b   :  { %v4003_v32 = vadd.f32 %v4068_v20, %v4002_v58 }
0x1c7c   :  { %v4012_v33 = vadd.f32 %v4008_v31, %v3846_v22 }
0x1c7d   :  { %v4011_v34 = vadd.f32 %v4003_v32, %v3845_v21 }
0x1c7e   :  { %v4016_v35 = vsel %vm192_vm0, %v4012_v33, 0.0 }
0x1c7f   :  { %4017 = vadd.xlane.f32.xlu1 %v4016_v35  ;;  %v4013_v0 = vsel %vm192_vm0, %v4011_v34, 0.0 }
0x1c80   :  { %4014 = vadd.xlane.f32.xlu0 %v4013_v0 }
0x1d0c   :  { %v4018_v1 = vpop.xlane.xlu1 %4017 }
0x1d0d   :  { %v4020_v37 = vmul.f32 0.03125, %v4018_v1  ;;  %v4015_v60 = vpop.xlane.xlu0 %4014 }
0x1d0e   :  { %v4019_v2 = vmul.f32 0.03125, %v4015_v60 }
0x1d0f   :  { %v4022_v4 = vsub.f32 %v4012_v33, %v4020_v37 }
0x1d10   :  { %v4021_v38 = vsub.f32 %v4011_v34, %v4019_v2 }
0x1d11   :  { %v4024_v40 = vmul.f32 %v4022_v4, %v4022_v4 }
0x1d12   :  { %v4023_v41 = vmul.f32 %v4021_v38, %v4021_v38 }
0x1d13   :  { %v4028_v57 = vsel %vm192_vm0, %v4024_v40, 0.0 }
0x1d14   :  { %4029 = vadd.xlane.f32.xlu1 %v4028_v57  ;;  %v4025_v42 = vsel %vm192_vm0, %v4023_v41, 0.0 }
0x1d15   :  { %4026 = vadd.xlane.f32.xlu0 %v4025_v42 }
0x1da1   :  { %v4030_v43 = vpop.xlane.xlu1 %4029 }
0x1da2   :  { %v4032_v45 = vmul.f32 0.03125, %v4030_v43  ;;  %v4027_v46 = vpop.xlane.xlu0 %4026 }
0x1da3   :  { %v4031_v47 = vmul.f32 0.03125, %v4027_v46 }
0x1da4   :  { %v4034_v49 = vadd.f32 1e-05, %v4032_v45 }
0x1da5   :  { %v4033_v50 = vadd.f32 1e-05, %v4031_v47 }
0x1da6   :  { %4674 = vrsqrt.f32 %v4034_v49 }
0x1da7   :  { %4676 = vrsqrt.f32 %v4033_v50 }
0x1db0   :  { %v4675_v54 = vpop.eup %4674 }
0x1db1   :  { %v4677_v55 = vpop.eup %4676  ;;  %v4038_v62 = vmul.f32 %v4675_v54, %v4022_v4 }
0x1db2   :  { %v4037_v52 = vmul.f32 %v4677_v55, %v4021_v38 }
0x1db3   :  { %v4040_v51 = vmul.f32 %v5280_v44, %v4038_v62 }
0x1db4   :  { %v4039_v12 = vmul.f32 %v5280_v44, %v4037_v52 }
0x1db5   :  { %v4042_v3 = vadd.f32 %v5287_v48, %v4040_v51 }
0x1db6   :  { %v4041_v39 = vadd.f32 %v5287_v48, %v4039_v12 }
0x1db7   :  { %4044 = vst.msk [vmem:[#allocation13 + $0x8] sm:$0xff] %vm192_vm0, %v4042_v3 }
0x1db8   :  { %4043 = vst.msk [vmem:[#allocation13] sm:$0xff] %vm192_vm0, %v4041_v39 }
0x1db9   :  { %4821 = shalt.err (!%p4818_p10)
}
0x1dba   :  { %s4822_s8 = scalar_lea.hbm %s5530_s12, 256 }
0x1dbb   :  { %p4823_p11 = scmp.ne.s32.totalorder %s5530_s12, %s4822_s8  ;;  %p4826_p12 = scmp.lt.u32.totalorder %s4822_s8, %s5530_s12 }
0x1dbd   :  { %p4828_p13 = pnand %p4826_p12, %p4823_p11 }
0x1dbf   :  { %4831 = shalt.err (!%p4828_p13)
}
0x1dc0   :  { %4056 = dma.vmem_to_hbm [thread:$0]  %s4051_s9, 256, %s5530_s12, [#allocation4], %s4844_s15, %s4844_s15, %s4845_s16  }
0x1dc1   :  { %4840 = dma.done.wait [#allocation4], 256  }
0x1dc2   :  { %4841 = vsyncadd [#allocation4], 4294967040 }
0x1dc3   :  { %4060 = vsyncpa [#allocation3], 1 }
0x1dc4   :  { %4061 = vsyncpa [#allocation6], 1 }
0x1dc5   :  { %4062 = vsyncpa [#allocation9], 1 }
0x1dc6   :  { %4063 = vsyncpa [#allocation12], 1 }
0x1dc7   :  { %4064 = vsyncpa [#allocation4], 1 }

</bundles_post_ra>
